<compile_context>
chip_gen: v7x
topology: tpu7x:2x2x1
jax: 0.10.0
libtpu: 0.0.40
codegen_flags: <defaults>
</compile_context>

<pallas_src>
import jax
import jax.numpy as jnp
from jax import lax
from jax.experimental import pallas as pl
from jax.experimental.pallas import tpu as pltpu


# ------------------------------ helpers --------------------------------------

def _gelu(x):
    return jax.nn.gelu(x, approximate=True)


def _layernorm(x, g, b, eps=1e-5):
    mu = jnp.mean(x, axis=-1, keepdims=True)
    var = jnp.mean((x - mu) ** 2, axis=-1, keepdims=True)
    return (x - mu) * lax.rsqrt(var + eps) * g + b


# ----------------------------- Pallas kernel ----------------------------------

def s5_stack_kernel(
    x_ref,              # (Bt, L, D)  f32   input (fetched once per batch block)
    ln1_g, ln1_b,       # (1, D)      f32
    buT,                # (D, 2P)     bf16  [Re(B_bar)^T | Im(B_bar)^T]
    lam_pr, lam_pi,     # (n_pows, P) f32   Re/Im of Lambda_bar^(2^k)
    cTcat,              # (2P, D)     bf16  [2*Re(C)^T ; -2*Im(C)^T]
    d_vec,              # (1, D)      f32
    ln2_g, ln2_b,       # (1, D)      f32
    wv, wg,             # (D, F)      bf16  GEGLU value / gate projections
    wdec,               # (F, D)      bf16
    out_ref,            # (Bt, L, D)  f32   resident across the layer grid axis
):
    layer = pl.program_id(1)

    # First layer of this batch block: seed the resident activation buffer.
    @pl.when(layer == 0)
    def _():
        out_ref[...] = x_ref[...]

    act = out_ref[...].astype(jnp.float32)                  # (Bt, L, D)
    Bt, L, D = act.shape
    P = lam_pr.shape[-1]

    # ---- attn_norm ----
    fx = _layernorm(act, ln1_g[...], ln1_b[...])
    res = fx

    # ---- S5 input projection: one fused (re|im) bf16 MXU matmul ----
    bu = jnp.dot(fx.reshape(Bt * L, D).astype(jnp.bfloat16), buT[...],
                 preferred_element_type=jnp.float32)        # (Bt*L, 2P)
    bu = bu.reshape(Bt, L, 2 * P)
    hr = bu[..., :P]                                        # (Bt, L, P)
    hi = bu[..., P:]

    # ---- log-depth (Hillis-Steele) scan: h_t = Lambda_bar*h_{t-1} + bu_t ----
    # Pass s:  h_t += Lambda_bar^s * h_{t-s}   (zero for t < s), s = 1,2,4,...
    lam_r = lam_pr[...]
    lam_i = lam_pi[...]
    shift = 1
    for k in range(lam_r.shape[0]):
        if shift >= L:
            break
        pr = lam_r[k:k + 1, :]                              # (1, P) -> bcast
        pi = lam_i[k:k + 1, :]
        zero = jnp.zeros((Bt, shift, P), jnp.float32)
        hr_s = jnp.concatenate([zero, hr[:, :L - shift, :]], axis=1)
        hi_s = jnp.concatenate([zero, hi[:, :L - shift, :]], axis=1)
        hr = hr + pr * hr_s - pi * hi_s
        hi = hi + pr * hi_s + pi * hr_s
        shift *= 2

    # ---- S5 output projection: fused [hr|hi] @ [2Cre^T ; -2Cim^T] + D*u ----
    hcat = jnp.concatenate([hr, hi], axis=-1).reshape(Bt * L, 2 * P)
    y = jnp.dot(hcat.astype(jnp.bfloat16), cTcat[...],
                preferred_element_type=jnp.float32).reshape(Bt, L, D)
    y = y + fx * d_vec[...]

    # ---- residual + gelu, ff_norm ----
    x1 = _gelu(y) + res
    fx2 = _layernorm(x1, ln2_g[...], ln2_b[...])

    # ---- feed-forward with GEGLU (wenc pre-split wrapper-side: lane dense) ----
    fx2_2d = fx2.reshape(Bt * L, D).astype(jnp.bfloat16)
    v = jnp.dot(fx2_2d, wv[...], preferred_element_type=jnp.float32)
    g = jnp.dot(fx2_2d, wg[...], preferred_element_type=jnp.float32)
    h = (v * _gelu(g)).astype(jnp.bfloat16)
    ff = jnp.dot(h, wdec[...], preferred_element_type=jnp.float32)
    out = ff.reshape(Bt, L, D) + fx2

    out_ref[...] = out.astype(out_ref.dtype)


# ------------------------------- wrapper --------------------------------------

_STACK_ORDER = ("ln1_g", "ln1_b", "buT", "lam_pow_re", "lam_pow_im", "cTcat",
                "d_vec", "ln2_g", "ln2_b", "wv", "wg", "wdec")


def multilayer_s5_block_pallas(x, packed, *, block_b=8):
    """Full layer stack in one pallas_call; grid = (batch_blocks, num_layers)."""
    B, L, D = x.shape
    NL = packed["ln1_g"].shape[0]

    bt = min(B, block_b)
    while B % bt:                      # largest divisor of B that is <= block_b
        bt -= 1

    weights = [packed[k] for k in _STACK_ORDER]

    def wspec(arr):
        tail = arr.shape[1:]           # leading layer dim is squeezed in-kernel
        return pl.BlockSpec((None,) + tail,
                            lambda b, l, _t=len(tail): (l,) + (0,) * _t)

    return pl.pallas_call(
        s5_stack_kernel,
        out_shape=jax.ShapeDtypeStruct((B, L, D), x.dtype),
        grid=(B // bt, NL),
        in_specs=[pl.BlockSpec((bt, L, D), lambda b, l: (b, 0, 0))]
                 + [wspec(w) for w in weights],
        out_specs=pl.BlockSpec((bt, L, D), lambda b, l: (b, 0, 0)),
        compiler_params=pltpu.CompilerParams(
            dimension_semantics=("parallel", "arbitrary"),
            vmem_limit_bytes=32 * 1024 * 1024,
        ),
    )(x, *weights)


# --------------------------- parameter setup ----------------------------------

def init_layer_params(key, dim, state_dim, ff_dim,
                      dt_min=1e-3, dt_max=1e-1, step_scale=1.0):
    """Deterministic synthetic S5Block params with ZOH discretization baked in."""
    ks = jax.random.split(key, 7)

    lam_re = -(0.5 + 0.01 * jnp.arange(state_dim, dtype=jnp.float32))
    lam_im = jnp.pi * jnp.arange(state_dim, dtype=jnp.float32)
    lam = (lam_re + 1j * lam_im).astype(jnp.complex64)

    B_c = (jax.random.normal(ks[0], (state_dim, dim))
           + 1j * jax.random.normal(ks[1], (state_dim, dim))) / jnp.sqrt(2.0 * dim)
    C_c = (jax.random.normal(ks[2], (dim, state_dim))
           + 1j * jax.random.normal(ks[3], (dim, state_dim))) / jnp.sqrt(2.0 * state_dim)
    d_vec = 0.1 * jax.random.normal(ks[4], (dim,), dtype=jnp.float32)

    log_step = jnp.linspace(jnp.log(dt_min), jnp.log(dt_max), state_dim)
    dt = jnp.exp(log_step).astype(jnp.float32) * step_scale

    lam_bar = jnp.exp(lam * dt)                                # ZOH
    B_bar = ((lam_bar - 1.0) / lam)[:, None] * B_c.astype(jnp.complex64)

    wenc = jax.random.normal(ks[5], (2 * ff_dim, dim), jnp.float32) / jnp.sqrt(dim)
    wdec = jax.random.normal(ks[6], (dim, ff_dim), jnp.float32) / jnp.sqrt(ff_dim)

    return dict(
        ln1_g=jnp.ones((dim,), jnp.float32), ln1_b=jnp.zeros((dim,), jnp.float32),
        lam_bar=lam_bar.astype(jnp.complex64), B_bar=B_bar.astype(jnp.complex64),
        C=C_c.astype(jnp.complex64), d_vec=d_vec,
        ln2_g=jnp.ones((dim,), jnp.float32), ln2_b=jnp.zeros((dim,), jnp.float32),
        wenc=wenc, wdec=wdec)


def pack_params_for_kernel(layer_params, seq_len):
    """Stack per-layer params along a leading layer axis, in kernel layout."""
    n_pows = max((seq_len - 1).bit_length(), 1)     # ceil(log2(L)), >= 1
    packed = {k: [] for k in _STACK_ORDER}
    bf16 = lambda a: jnp.asarray(a, jnp.bfloat16)
    f32 = lambda a: jnp.asarray(a, jnp.float32)

    for p in layer_params:
        F = p["wdec"].shape[1]
        buT = jnp.concatenate([jnp.real(p["B_bar"]).T, jnp.imag(p["B_bar"]).T],
                              axis=-1)                              # (D, 2P)
        cTcat = jnp.concatenate([2.0 * jnp.real(p["C"]).T,
                                 -2.0 * jnp.imag(p["C"]).T], axis=0)  # (2P, D)

        pows_re, pows_im, cur = [], [], p["lam_bar"]
        for _ in range(n_pows):
            pows_re.append(jnp.real(cur))
            pows_im.append(jnp.imag(cur))
            cur = cur * cur
        lam_pr = f32(jnp.stack(pows_re))                            # (n_pows, P)
        lam_pi = f32(jnp.stack(pows_im))

        wenc_T = p["wenc"].T                                        # (D, 2F)

        packed["ln1_g"].append(f32(p["ln1_g"])[None, :])
        packed["ln1_b"].append(f32(p["ln1_b"])[None, :])
        packed["buT"].append(bf16(buT))
        packed["lam_pow_re"].append(lam_pr)
        packed["lam_pow_im"].append(lam_pi)
        packed["cTcat"].append(bf16(cTcat))
        packed["d_vec"].append(f32(p["d_vec"])[None, :])
        packed["ln2_g"].append(f32(p["ln2_g"])[None, :])
        packed["ln2_b"].append(f32(p["ln2_b"])[None, :])
        packed["wv"].append(bf16(wenc_T[:, :F]))
        packed["wg"].append(bf16(wenc_T[:, F:]))
        packed["wdec"].append(bf16(p["wdec"].T))

    return {k: jnp.stack(v) for k, v in packed.items()}


# --------------------------- pure-JAX reference --------------------------------

def _layer_ref(x, p, mm_dtype):
    def mm(a, w):
        return jnp.dot(a.astype(mm_dtype), jnp.asarray(w, mm_dtype),
                       preferred_element_type=jnp.float32)

    fx = _layernorm(x, p["ln1_g"], p["ln1_b"])

    hr0 = mm(fx, jnp.real(p["B_bar"]).T)
    hi0 = mm(fx, jnp.imag(p["B_bar"]).T)
    bu = hr0.astype(jnp.complex64) + 1j * hi0.astype(jnp.complex64)
    lam = p["lam_bar"]

    def step(c, u):
        n = lam * c + u
        return n, n

    init = jnp.zeros((x.shape[0], lam.shape[0]), jnp.complex64)
    _, hs = lax.scan(step, init, jnp.swapaxes(bu, 0, 1))
    hs = jnp.swapaxes(hs, 0, 1)                                     # (B, L, P)

    y = 2.0 * (mm(hs.real, jnp.real(p["C"]).T) - mm(hs.imag, jnp.imag(p["C"]).T))
    y = y + fx * p["d_vec"]
    x1 = _gelu(y) + fx

    fx2 = _layernorm(x1, p["ln2_g"], p["ln2_b"])
    h = mm(fx2, p["wenc"].T)
    F = p["wdec"].shape[1]
    g = h[..., :F] * _gelu(h[..., F:])
    return mm(g, p["wdec"].T) + fx2


def multilayer_ref(x, layer_params, mm_dtype=jnp.float32):
    for p in layer_params:
        x = _layer_ref(x, p, mm_dtype)
    return x


# ---------------------------------- main ---------------------------------------

if __name__ == "__main__":
    B, L, D = 2, 8, 32        # batch, sequence, model dim
    P = 16                    # SSM state dim
    FF = D                    # ff_mult = 1.0
    NUM_LAYERS = 2

    key = jax.random.PRNGKey(0)
    k_x, k_p = jax.random.split(key)
    x = jax.random.normal(k_x, (B, L, D), dtype=jnp.float32)

    layer_keys = jax.random.split(k_p, NUM_LAYERS)
    layer_params = [init_layer_params(k, D, P, FF, step_scale=1.0)
                    for k in layer_keys]
    packed = pack_params_for_kernel(layer_params, L)

    out = jax.block_until_ready(multilayer_s5_block_pallas(x, packed))
    assert out.shape == (B, L, D)

    # Matched-precision reference (bf16 matmul inputs, f32 accumulation).
    ref_bf16 = jax.block_until_ready(multilayer_ref(x, layer_params, jnp.bfloat16))
    err_bf16 = float(jnp.max(jnp.abs(out - ref_bf16)))
    # Full-f32 reference (sanity; deviation is only bf16-matmul rounding).
    ref_f32 = jax.block_until_ready(multilayer_ref(x, layer_params, jnp.float32))
    err_f32 = float(jnp.max(jnp.abs(out - ref_f32)))

    assert err_bf16 < 2e-2, ("bf16-matched reference mismatch", err_bf16)
    assert err_f32 < 1e-1, ("f32 reference mismatch", err_f32)

    print("KERNEL_OK")
</pallas_src>

<mosaic_0001>
module attributes {stable_mosaic.version = 11 : i64} {
  func.func @s5_stack_kernel(%arg0: i32, %arg1: i32, %arg2: memref<2x8x32xf32, #tpu.memory_space<vmem>>, %arg3: memref<1x1x32xf32, #tpu.memory_space<vmem>>, %arg4: memref<1x1x32xf32, #tpu.memory_space<vmem>>, %arg5: memref<1x32x32xbf16, #tpu.memory_space<vmem>>, %arg6: memref<1x3x16xf32, #tpu.memory_space<vmem>>, %arg7: memref<1x3x16xf32, #tpu.memory_space<vmem>>, %arg8: memref<1x32x32xbf16, #tpu.memory_space<vmem>>, %arg9: memref<1x1x32xf32, #tpu.memory_space<vmem>>, %arg10: memref<1x1x32xf32, #tpu.memory_space<vmem>>, %arg11: memref<1x1x32xf32, #tpu.memory_space<vmem>>, %arg12: memref<1x32x32xbf16, #tpu.memory_space<vmem>>, %arg13: memref<1x32x32xbf16, #tpu.memory_space<vmem>>, %arg14: memref<1x32x32xbf16, #tpu.memory_space<vmem>>, %arg15: memref<2x8x32xf32, #tpu.memory_space<vmem>>) attributes {dimension_semantics = [#tpu.dimension_semantics<parallel>, #tpu.dimension_semantics<arbitrary>], iteration_bounds = array<i64: 1, 2>, scalar_prefetch = 0 : i64, scratch_operands = 0 : i64, tpu.core_type = #tpu.core_type<tc>, window_params = [{transform_indices = @transform_0, window_bounds = array<i64: 2, 8, 32>}, {transform_indices = @transform_1, window_bounds = array<i64: 1, 1, 32>}, {transform_indices = @transform_2, window_bounds = array<i64: 1, 1, 32>}, {transform_indices = @transform_3, window_bounds = array<i64: 1, 32, 32>}, {transform_indices = @transform_4, window_bounds = array<i64: 1, 3, 16>}, {transform_indices = @transform_5, window_bounds = array<i64: 1, 3, 16>}, {transform_indices = @transform_6, window_bounds = array<i64: 1, 32, 32>}, {transform_indices = @transform_7, window_bounds = array<i64: 1, 1, 32>}, {transform_indices = @transform_8, window_bounds = array<i64: 1, 1, 32>}, {transform_indices = @transform_9, window_bounds = array<i64: 1, 1, 32>}, {transform_indices = @transform_10, window_bounds = array<i64: 1, 32, 32>}, {transform_indices = @transform_11, window_bounds = array<i64: 1, 32, 32>}, {transform_indices = @transform_12, window_bounds = array<i64: 1, 32, 32>}, {transform_indices = @transform_13, window_bounds = array<i64: 2, 8, 32>}]} {
    %c0_i32 = arith.constant 0 : i32
    %0 = arith.cmpi eq, %arg1, %c0_i32 : i32
    %1 = arith.extui %0 : i1 to i32
    %c0_i32_0 = arith.constant 0 : i32
    %2 = arith.cmpi ne, %1, %c0_i32_0 : i32
    scf.if %2 {
      %c0_67 = arith.constant 0 : index
      %c0_68 = arith.constant 0 : index
      %c0_69 = arith.constant 0 : index
      %197 = vector.load %arg2[%c0_67, %c0_68, %c0_69] : memref<2x8x32xf32, #tpu.memory_space<vmem>>, vector<2x8x32xf32>
      %c0_70 = arith.constant 0 : index
      %c0_71 = arith.constant 0 : index
      %c0_72 = arith.constant 0 : index
      %198 = vector.load %arg15[%c0_70, %c0_71, %c0_72] : memref<2x8x32xf32, #tpu.memory_space<vmem>>, vector<2x8x32xf32>
      tpu.vector_store %arg15[%c0_70, %c0_71, %c0_72], %197 {strides = array<i32>} : memref<2x8x32xf32, #tpu.memory_space<vmem>>, vector<2x8x32xf32>,
    } else {
    }
    %c0 = arith.constant 0 : index
    %c0_1 = arith.constant 0 : index
    %c0_2 = arith.constant 0 : index
    %3 = vector.load %arg15[%c0, %c0_1, %c0_2] : memref<2x8x32xf32, #tpu.memory_space<vmem>>, vector<2x8x32xf32>
    %c0_3 = arith.constant 0 : index
    %c0_4 = arith.constant 0 : index
    %c0_5 = arith.constant 0 : index
    %4 = vector.load %arg3[%c0_3, %c0_4, %c0_5] : memref<1x1x32xf32, #tpu.memory_space<vmem>>, vector<1x1x32xf32>
    %5 = vector.shape_cast %4 : vector<1x1x32xf32> to vector<1x32xf32>
    %c0_6 = arith.constant 0 : index
    %c0_7 = arith.constant 0 : index
    %c0_8 = arith.constant 0 : index
    %6 = vector.load %arg4[%c0_6, %c0_7, %c0_8] : memref<1x1x32xf32, #tpu.memory_space<vmem>>, vector<1x1x32xf32>
    %7 = vector.shape_cast %6 : vector<1x1x32xf32> to vector<1x32xf32>
    %cst = arith.constant dense<0.000000e+00> : vector<2x8xf32>
    %8 = vector.multi_reduction <add>, %3, %cst [2] : vector<2x8x32xf32> to vector<2x8xf32>
    %9 = vector.shape_cast %8 : vector<2x8xf32> to vector<2x8x1xf32>
    %cst_9 = arith.constant 3.200000e+01 : f32
    %10 = vector.broadcast %cst_9 : f32 to vector<2x8x1xf32>
    %11 = arith.divf %9, %10 : vector<2x8x1xf32>
    %12 = vector.broadcast %11 : vector<2x8x1xf32> to vector<2x8x32xf32>
    %13 = arith.subf %3, %12 : vector<2x8x32xf32>
    %14 = arith.mulf %13, %13 : vector<2x8x32xf32>
    %cst_10 = arith.constant dense<0.000000e+00> : vector<2x8xf32>
    %15 = vector.multi_reduction <add>, %14, %cst_10 [2] : vector<2x8x32xf32> to vector<2x8xf32>
    %16 = vector.shape_cast %15 : vector<2x8xf32> to vector<2x8x1xf32>
    %cst_11 = arith.constant 3.200000e+01 : f32
    %17 = vector.broadcast %cst_11 : f32 to vector<2x8x1xf32>
    %18 = arith.divf %16, %17 : vector<2x8x1xf32>
    %19 = vector.broadcast %11 : vector<2x8x1xf32> to vector<2x8x32xf32>
    %20 = arith.subf %3, %19 : vector<2x8x32xf32>
    %cst_12 = arith.constant 9.99999974E-6 : f32
    %21 = vector.broadcast %cst_12 : f32 to vector<2x8x1xf32>
    %22 = arith.addf %18, %21 : vector<2x8x1xf32>
    %23 = math.rsqrt %22 : vector<2x8x1xf32>
    %24 = vector.broadcast %23 : vector<2x8x1xf32> to vector<2x8x32xf32>
    %25 = arith.mulf %20, %24 : vector<2x8x32xf32>
    %26 = vector.shape_cast %5 : vector<1x32xf32> to vector<1x1x32xf32>
    %27 = vector.broadcast %26 : vector<1x1x32xf32> to vector<2x8x32xf32>
    %28 = arith.mulf %25, %27 : vector<2x8x32xf32>
    %29 = vector.shape_cast %7 : vector<1x32xf32> to vector<1x1x32xf32>
    %30 = vector.broadcast %29 : vector<1x1x32xf32> to vector<2x8x32xf32>
    %31 = arith.addf %28, %30 : vector<2x8x32xf32>
    %32 = vector.shape_cast %31 : vector<2x8x32xf32> to vector<16x32xf32>
    %33 = arith.truncf %32 : vector<16x32xf32> to vector<16x32xbf16>
    %c0_13 = arith.constant 0 : index
    %c0_14 = arith.constant 0 : index
    %c0_15 = arith.constant 0 : index
    %34 = vector.load %arg5[%c0_13, %c0_14, %c0_15] : memref<1x32x32xbf16, #tpu.memory_space<vmem>>, vector<1x32x32xbf16>
    %35 = vector.shape_cast %34 : vector<1x32x32xbf16> to vector<32x32xbf16>
    %cst_16 = arith.constant dense<0.000000e+00> : vector<16x32xf32>
    %36 = tpu.matmul %33, %35, %cst_16 {dimension_numbers = #tpu.dot_dimension_numbers<[1], [0], [0], [1], [0, 0, 1, 1], [], []>} : vector<16x32xbf16>, vector<32x32xbf16>, vector<16x32xf32> -> vector<16x32xf32>
    %37 = vector.shape_cast %36 : vector<16x32xf32> to vector<2x8x32xf32>
    %38 = vector.extract_strided_slice %37 {offsets = [0, 0, 0], sizes = [2, 8, 16], strides = [1, 1, 1]} : vector<2x8x32xf32> to vector<2x8x16xf32>
    %39 = vector.extract_strided_slice %37 {offsets = [0, 0, 16], sizes = [2, 8, 16], strides = [1, 1, 1]} : vector<2x8x32xf32> to vector<2x8x16xf32>
    %c0_17 = arith.constant 0 : index
    %c0_18 = arith.constant 0 : index
    %c0_19 = arith.constant 0 : index
    %40 = vector.load %arg6[%c0_17, %c0_18, %c0_19] : memref<1x3x16xf32, #tpu.memory_space<vmem>>, vector<1x3x16xf32>
    %41 = vector.shape_cast %40 : vector<1x3x16xf32> to vector<3x16xf32>
    %c0_20 = arith.constant 0 : index
    %c0_21 = arith.constant 0 : index
    %c0_22 = arith.constant 0 : index
    %42 = vector.load %arg7[%c0_20, %c0_21, %c0_22] : memref<1x3x16xf32, #tpu.memory_space<vmem>>, vector<1x3x16xf32>
    %43 = vector.shape_cast %42 : vector<1x3x16xf32> to vector<3x16xf32>
    %44 = vector.extract_strided_slice %41 {offsets = [0, 0], sizes = [1, 16], strides = [1, 1]} : vector<3x16xf32> to vector<1x16xf32>
    %45 = vector.extract_strided_slice %43 {offsets = [0, 0], sizes = [1, 16], strides = [1, 1]} : vector<3x16xf32> to vector<1x16xf32>
    %cst_23 = arith.constant 0.000000e+00 : f32
    %46 = vector.broadcast %cst_23 : f32 to vector<2x1x16xf32>
    %47 = vector.extract_strided_slice %38 {offsets = [0, 0, 0], sizes = [2, 7, 16], strides = [1, 1, 1]} : vector<2x8x16xf32> to vector<2x7x16xf32>
    %48 = tpu.concatenate %46, %47 in 1 : vector<2x1x16xf32>, vector<2x7x16xf32> -> vector<2x8x16xf32>
    %49 = vector.extract_strided_slice %39 {offsets = [0, 0, 0], sizes = [2, 7, 16], strides = [1, 1, 1]} : vector<2x8x16xf32> to vector<2x7x16xf32>
    %50 = tpu.concatenate %46, %49 in 1 : vector<2x1x16xf32>, vector<2x7x16xf32> -> vector<2x8x16xf32>
    %51 = vector.shape_cast %44 : vector<1x16xf32> to vector<1x1x16xf32>
    %52 = vector.broadcast %51 : vector<1x1x16xf32> to vector<2x8x16xf32>
    %53 = arith.mulf %52, %48 : vector<2x8x16xf32>
    %54 = arith.addf %38, %53 : vector<2x8x16xf32>
    %55 = vector.shape_cast %45 : vector<1x16xf32> to vector<1x1x16xf32>
    %56 = vector.broadcast %55 : vector<1x1x16xf32> to vector<2x8x16xf32>
    %57 = arith.mulf %56, %50 : vector<2x8x16xf32>
    %58 = arith.subf %54, %57 : vector<2x8x16xf32>
    %59 = vector.shape_cast %44 : vector<1x16xf32> to vector<1x1x16xf32>
    %60 = vector.broadcast %59 : vector<1x1x16xf32> to vector<2x8x16xf32>
    %61 = arith.mulf %60, %50 : vector<2x8x16xf32>
    %62 = arith.addf %39, %61 : vector<2x8x16xf32>
    %63 = vector.shape_cast %45 : vector<1x16xf32> to vector<1x1x16xf32>
    %64 = vector.broadcast %63 : vector<1x1x16xf32> to vector<2x8x16xf32>
    %65 = arith.mulf %64, %48 : vector<2x8x16xf32>
    %66 = arith.addf %62, %65 : vector<2x8x16xf32>
    %67 = vector.extract_strided_slice %41 {offsets = [1, 0], sizes = [1, 16], strides = [1, 1]} : vector<3x16xf32> to vector<1x16xf32>
    %68 = vector.extract_strided_slice %43 {offsets = [1, 0], sizes = [1, 16], strides = [1, 1]} : vector<3x16xf32> to vector<1x16xf32>
    %cst_24 = arith.constant 0.000000e+00 : f32
    %69 = vector.broadcast %cst_24 : f32 to vector<2x2x16xf32>
    %70 = vector.extract_strided_slice %58 {offsets = [0, 0, 0], sizes = [2, 6, 16], strides = [1, 1, 1]} : vector<2x8x16xf32> to vector<2x6x16xf32>
    %71 = tpu.concatenate %69, %70 in 1 : vector<2x2x16xf32>, vector<2x6x16xf32> -> vector<2x8x16xf32>
    %72 = vector.extract_strided_slice %66 {offsets = [0, 0, 0], sizes = [2, 6, 16], strides = [1, 1, 1]} : vector<2x8x16xf32> to vector<2x6x16xf32>
    %73 = tpu.concatenate %69, %72 in 1 : vector<2x2x16xf32>, vector<2x6x16xf32> -> vector<2x8x16xf32>
    %74 = vector.shape_cast %67 : vector<1x16xf32> to vector<1x1x16xf32>
    %75 = vector.broadcast %74 : vector<1x1x16xf32> to vector<2x8x16xf32>
    %76 = arith.mulf %75, %71 : vector<2x8x16xf32>
    %77 = arith.addf %58, %76 : vector<2x8x16xf32>
    %78 = vector.shape_cast %68 : vector<1x16xf32> to vector<1x1x16xf32>
    %79 = vector.broadcast %78 : vector<1x1x16xf32> to vector<2x8x16xf32>
    %80 = arith.mulf %79, %73 : vector<2x8x16xf32>
    %81 = arith.subf %77, %80 : vector<2x8x16xf32>
    %82 = vector.shape_cast %67 : vector<1x16xf32> to vector<1x1x16xf32>
    %83 = vector.broadcast %82 : vector<1x1x16xf32> to vector<2x8x16xf32>
    %84 = arith.mulf %83, %73 : vector<2x8x16xf32>
    %85 = arith.addf %66, %84 : vector<2x8x16xf32>
    %86 = vector.shape_cast %68 : vector<1x16xf32> to vector<1x1x16xf32>
    %87 = vector.broadcast %86 : vector<1x1x16xf32> to vector<2x8x16xf32>
    %88 = arith.mulf %87, %71 : vector<2x8x16xf32>
    %89 = arith.addf %85, %88 : vector<2x8x16xf32>
    %90 = vector.extract_strided_slice %41 {offsets = [2, 0], sizes = [1, 16], strides = [1, 1]} : vector<3x16xf32> to vector<1x16xf32>
    %91 = vector.extract_strided_slice %43 {offsets = [2, 0], sizes = [1, 16], strides = [1, 1]} : vector<3x16xf32> to vector<1x16xf32>
    %cst_25 = arith.constant 0.000000e+00 : f32
    %92 = vector.broadcast %cst_25 : f32 to vector<2x4x16xf32>
    %93 = vector.extract_strided_slice %81 {offsets = [0, 0, 0], sizes = [2, 4, 16], strides = [1, 1, 1]} : vector<2x8x16xf32> to vector<2x4x16xf32>
    %94 = tpu.concatenate %92, %93 in 1 : vector<2x4x16xf32>, vector<2x4x16xf32> -> vector<2x8x16xf32>
    %95 = vector.extract_strided_slice %89 {offsets = [0, 0, 0], sizes = [2, 4, 16], strides = [1, 1, 1]} : vector<2x8x16xf32> to vector<2x4x16xf32>
    %96 = tpu.concatenate %92, %95 in 1 : vector<2x4x16xf32>, vector<2x4x16xf32> -> vector<2x8x16xf32>
    %97 = vector.shape_cast %90 : vector<1x16xf32> to vector<1x1x16xf32>
    %98 = vector.broadcast %97 : vector<1x1x16xf32> to vector<2x8x16xf32>
    %99 = arith.mulf %98, %94 : vector<2x8x16xf32>
    %100 = arith.addf %81, %99 : vector<2x8x16xf32>
    %101 = vector.shape_cast %91 : vector<1x16xf32> to vector<1x1x16xf32>
    %102 = vector.broadcast %101 : vector<1x1x16xf32> to vector<2x8x16xf32>
    %103 = arith.mulf %102, %96 : vector<2x8x16xf32>
    %104 = arith.subf %100, %103 : vector<2x8x16xf32>
    %105 = vector.shape_cast %90 : vector<1x16xf32> to vector<1x1x16xf32>
    %106 = vector.broadcast %105 : vector<1x1x16xf32> to vector<2x8x16xf32>
    %107 = arith.mulf %106, %96 : vector<2x8x16xf32>
    %108 = arith.addf %89, %107 : vector<2x8x16xf32>
    %109 = vector.shape_cast %91 : vector<1x16xf32> to vector<1x1x16xf32>
    %110 = vector.broadcast %109 : vector<1x1x16xf32> to vector<2x8x16xf32>
    %111 = arith.mulf %110, %94 : vector<2x8x16xf32>
    %112 = arith.addf %108, %111 : vector<2x8x16xf32>
    %113 = tpu.concatenate %104, %112 in 2 : vector<2x8x16xf32>, vector<2x8x16xf32> -> vector<2x8x32xf32>
    %114 = vector.shape_cast %113 : vector<2x8x32xf32> to vector<16x32xf32>
    %115 = arith.truncf %114 : vector<16x32xf32> to vector<16x32xbf16>
    %c0_26 = arith.constant 0 : index
    %c0_27 = arith.constant 0 : index
    %c0_28 = arith.constant 0 : index
    %116 = vector.load %arg8[%c0_26, %c0_27, %c0_28] : memref<1x32x32xbf16, #tpu.memory_space<vmem>>, vector<1x32x32xbf16>
    %117 = vector.shape_cast %116 : vector<1x32x32xbf16> to vector<32x32xbf16>
    %cst_29 = arith.constant dense<0.000000e+00> : vector<16x32xf32>
    %118 = tpu.matmul %115, %117, %cst_29 {dimension_numbers = #tpu.dot_dimension_numbers<[1], [0], [0], [1], [0, 0, 1, 1], [], []>} : vector<16x32xbf16>, vector<32x32xbf16>, vector<16x32xf32> -> vector<16x32xf32>
    %119 = vector.shape_cast %118 : vector<16x32xf32> to vector<2x8x32xf32>
    %c0_30 = arith.constant 0 : index
    %c0_31 = arith.constant 0 : index
    %c0_32 = arith.constant 0 : index
    %120 = vector.load %arg9[%c0_30, %c0_31, %c0_32] : memref<1x1x32xf32, #tpu.memory_space<vmem>>, vector<1x1x32xf32>
    %121 = vector.shape_cast %120 : vector<1x1x32xf32> to vector<1x32xf32>
    %122 = vector.shape_cast %121 : vector<1x32xf32> to vector<1x1x32xf32>
    %123 = vector.broadcast %122 : vector<1x1x32xf32> to vector<2x8x32xf32>
    %124 = arith.mulf %31, %123 : vector<2x8x32xf32>
    %125 = arith.addf %119, %124 : vector<2x8x32xf32>
    %126 = arith.mulf %125, %125 : vector<2x8x32xf32>
    %127 = arith.mulf %125, %126 : vector<2x8x32xf32>
    %cst_33 = arith.constant 4.471500e-02 : f32
    %128 = vector.broadcast %cst_33 : f32 to vector<2x8x32xf32>
    %129 = arith.mulf %128, %127 : vector<2x8x32xf32>
    %130 = arith.addf %125, %129 : vector<2x8x32xf32>
    %cst_34 = arith.constant 0.797884583 : f32
    %131 = vector.broadcast %cst_34 : f32 to vector<2x8x32xf32>
    %132 = arith.mulf %131, %130 : vector<2x8x32xf32>
    %133 = math.tanh %132 : vector<2x8x32xf32>
    %cst_35 = arith.constant 1.000000e+00 : f32
    %134 = vector.broadcast %cst_35 : f32 to vector<2x8x32xf32>
    %135 = arith.addf %134, %133 : vector<2x8x32xf32>
    %cst_36 = arith.constant 5.000000e-01 : f32
    %136 = vector.broadcast %cst_36 : f32 to vector<2x8x32xf32>
    %137 = arith.mulf %136, %135 : vector<2x8x32xf32>
    %138 = arith.mulf %125, %137 : vector<2x8x32xf32>
    %139 = arith.addf %138, %31 : vector<2x8x32xf32>
    %c0_37 = arith.constant 0 : index
    %c0_38 = arith.constant 0 : index
    %c0_39 = arith.constant 0 : index
    %140 = vector.load %arg10[%c0_37, %c0_38, %c0_39] : memref<1x1x32xf32, #tpu.memory_space<vmem>>, vector<1x1x32xf32>
    %141 = vector.shape_cast %140 : vector<1x1x32xf32> to vector<1x32xf32>
    %c0_40 = arith.constant 0 : index
    %c0_41 = arith.constant 0 : index
    %c0_42 = arith.constant 0 : index
    %142 = vector.load %arg11[%c0_40, %c0_41, %c0_42] : memref<1x1x32xf32, #tpu.memory_space<vmem>>, vector<1x1x32xf32>
    %143 = vector.shape_cast %142 : vector<1x1x32xf32> to vector<1x32xf32>
    %cst_43 = arith.constant dense<0.000000e+00> : vector<2x8xf32>
    %144 = vector.multi_reduction <add>, %139, %cst_43 [2] : vector<2x8x32xf32> to vector<2x8xf32>
    %145 = vector.shape_cast %144 : vector<2x8xf32> to vector<2x8x1xf32>
    %cst_44 = arith.constant 3.200000e+01 : f32
    %146 = vector.broadcast %cst_44 : f32 to vector<2x8x1xf32>
    %147 = arith.divf %145, %146 : vector<2x8x1xf32>
    %148 = vector.broadcast %147 : vector<2x8x1xf32> to vector<2x8x32xf32>
    %149 = arith.subf %139, %148 : vector<2x8x32xf32>
    %150 = arith.mulf %149, %149 : vector<2x8x32xf32>
    %cst_45 = arith.constant dense<0.000000e+00> : vector<2x8xf32>
    %151 = vector.multi_reduction <add>, %150, %cst_45 [2] : vector<2x8x32xf32> to vector<2x8xf32>
    %152 = vector.shape_cast %151 : vector<2x8xf32> to vector<2x8x1xf32>
    %cst_46 = arith.constant 3.200000e+01 : f32
    %153 = vector.broadcast %cst_46 : f32 to vector<2x8x1xf32>
    %154 = arith.divf %152, %153 : vector<2x8x1xf32>
    %155 = vector.broadcast %147 : vector<2x8x1xf32> to vector<2x8x32xf32>
    %156 = arith.subf %139, %155 : vector<2x8x32xf32>
    %cst_47 = arith.constant 9.99999974E-6 : f32
    %157 = vector.broadcast %cst_47 : f32 to vector<2x8x1xf32>
    %158 = arith.addf %154, %157 : vector<2x8x1xf32>
    %159 = math.rsqrt %158 : vector<2x8x1xf32>
    %160 = vector.broadcast %159 : vector<2x8x1xf32> to vector<2x8x32xf32>
    %161 = arith.mulf %156, %160 : vector<2x8x32xf32>
    %162 = vector.shape_cast %141 : vector<1x32xf32> to vector<1x1x32xf32>
    %163 = vector.broadcast %162 : vector<1x1x32xf32> to vector<2x8x32xf32>
    %164 = arith.mulf %161, %163 : vector<2x8x32xf32>
    %165 = vector.shape_cast %143 : vector<1x32xf32> to vector<1x1x32xf32>
    %166 = vector.broadcast %165 : vector<1x1x32xf32> to vector<2x8x32xf32>
    %167 = arith.addf %164, %166 : vector<2x8x32xf32>
    %168 = vector.shape_cast %167 : vector<2x8x32xf32> to vector<16x32xf32>
    %169 = arith.truncf %168 : vector<16x32xf32> to vector<16x32xbf16>
    %c0_48 = arith.constant 0 : index
    %c0_49 = arith.constant 0 : index
    %c0_50 = arith.constant 0 : index
    %170 = vector.load %arg12[%c0_48, %c0_49, %c0_50] : memref<1x32x32xbf16, #tpu.memory_space<vmem>>, vector<1x32x32xbf16>
    %171 = vector.shape_cast %170 : vector<1x32x32xbf16> to vector<32x32xbf16>
    %cst_51 = arith.constant dense<0.000000e+00> : vector<16x32xf32>
    %172 = tpu.matmul %169, %171, %cst_51 {dimension_numbers = #tpu.dot_dimension_numbers<[1], [0], [0], [1], [0, 0, 1, 1], [], []>} : vector<16x32xbf16>, vector<32x32xbf16>, vector<16x32xf32> -> vector<16x32xf32>
    %c0_52 = arith.constant 0 : index
    %c0_53 = arith.constant 0 : index
    %c0_54 = arith.constant 0 : index
    %173 = vector.load %arg13[%c0_52, %c0_53, %c0_54] : memref<1x32x32xbf16, #tpu.memory_space<vmem>>, vector<1x32x32xbf16>
    %174 = vector.shape_cast %173 : vector<1x32x32xbf16> to vector<32x32xbf16>
    %cst_55 = arith.constant dense<0.000000e+00> : vector<16x32xf32>
    %175 = tpu.matmul %169, %174, %cst_55 {dimension_numbers = #tpu.dot_dimension_numbers<[1], [0], [0], [1], [0, 0, 1, 1], [], []>} : vector<16x32xbf16>, vector<32x32xbf16>, vector<16x32xf32> -> vector<16x32xf32>
    %176 = arith.mulf %175, %175 : vector<16x32xf32>
    %177 = arith.mulf %175, %176 : vector<16x32xf32>
    %cst_56 = arith.constant 4.471500e-02 : f32
    %178 = vector.broadcast %cst_56 : f32 to vector<16x32xf32>
    %179 = arith.mulf %178, %177 : vector<16x32xf32>
    %180 = arith.addf %175, %179 : vector<16x32xf32>
    %cst_57 = arith.constant 0.797884583 : f32
    %181 = vector.broadcast %cst_57 : f32 to vector<16x32xf32>
    %182 = arith.mulf %181, %180 : vector<16x32xf32>
    %183 = math.tanh %182 : vector<16x32xf32>
    %cst_58 = arith.constant 1.000000e+00 : f32
    %184 = vector.broadcast %cst_58 : f32 to vector<16x32xf32>
    %185 = arith.addf %184, %183 : vector<16x32xf32>
    %cst_59 = arith.constant 5.000000e-01 : f32
    %186 = vector.broadcast %cst_59 : f32 to vector<16x32xf32>
    %187 = arith.mulf %186, %185 : vector<16x32xf32>
    %188 = arith.mulf %175, %187 : vector<16x32xf32>
    %189 = arith.mulf %172, %188 : vector<16x32xf32>
    %190 = arith.truncf %189 : vector<16x32xf32> to vector<16x32xbf16>
    %c0_60 = arith.constant 0 : index
    %c0_61 = arith.constant 0 : index
    %c0_62 = arith.constant 0 : index
    %191 = vector.load %arg14[%c0_60, %c0_61, %c0_62] : memref<1x32x32xbf16, #tpu.memory_space<vmem>>, vector<1x32x32xbf16>
    %192 = vector.shape_cast %191 : vector<1x32x32xbf16> to vector<32x32xbf16>
    %cst_63 = arith.constant dense<0.000000e+00> : vector<16x32xf32>
    %193 = tpu.matmul %190, %192, %cst_63 {dimension_numbers = #tpu.dot_dimension_numbers<[1], [0], [0], [1], [0, 0, 1, 1], [], []>} : vector<16x32xbf16>, vector<32x32xbf16>, vector<16x32xf32> -> vector<16x32xf32>
    %194 = vector.shape_cast %193 : vector<16x32xf32> to vector<2x8x32xf32>
    %195 = arith.addf %194, %167 : vector<2x8x32xf32>
    %c0_64 = arith.constant 0 : index
    %c0_65 = arith.constant 0 : index
    %c0_66 = arith.constant 0 : index
    %196 = vector.load %arg15[%c0_64, %c0_65, %c0_66] : memref<2x8x32xf32, #tpu.memory_space<vmem>>, vector<2x8x32xf32>
    tpu.vector_store %arg15[%c0_64, %c0_65, %c0_66], %195 {strides = array<i32>} : memref<2x8x32xf32, #tpu.memory_space<vmem>>, vector<2x8x32xf32>,
    return
  }
  func.func @transform_0(%arg0: i32, %arg1: i32) -> (i32, i32, i32) {
    %c0_i32 = arith.constant 0 : i32
    %c0_i32_0 = arith.constant 0 : i32
    %c0_i32_1 = arith.constant 0 : i32
    return %arg0, %c0_i32, %c0_i32_0 : i32, i32, i32
  }
  func.func @transform_1(%arg0: i32, %arg1: i32) -> (i32, i32, i32) {
    %c0_i32 = arith.constant 0 : i32
    %c0_i32_0 = arith.constant 0 : i32
    %c0_i32_1 = arith.constant 0 : i32
    return %arg1, %c0_i32, %c0_i32_0 : i32, i32, i32
  }
  func.func @transform_2(%arg0: i32, %arg1: i32) -> (i32, i32, i32) {
    %c0_i32 = arith.constant 0 : i32
    %c0_i32_0 = arith.constant 0 : i32
    %c0_i32_1 = arith.constant 0 : i32
    return %arg1, %c0_i32, %c0_i32_0 : i32, i32, i32
  }
  func.func @transform_3(%arg0: i32, %arg1: i32) -> (i32, i32, i32) {
    %c0_i32 = arith.constant 0 : i32
    %c0_i32_0 = arith.constant 0 : i32
    %c0_i32_1 = arith.constant 0 : i32
    return %arg1, %c0_i32, %c0_i32_0 : i32, i32, i32
  }
  func.func @transform_4(%arg0: i32, %arg1: i32) -> (i32, i32, i32) {
    %c0_i32 = arith.constant 0 : i32
    %c0_i32_0 = arith.constant 0 : i32
    %c0_i32_1 = arith.constant 0 : i32
    return %arg1, %c0_i32, %c0_i32_0 : i32, i32, i32
  }
  func.func @transform_5(%arg0: i32, %arg1: i32) -> (i32, i32, i32) {
    %c0_i32 = arith.constant 0 : i32
    %c0_i32_0 = arith.constant 0 : i32
    %c0_i32_1 = arith.constant 0 : i32
    return %arg1, %c0_i32, %c0_i32_0 : i32, i32, i32
  }
  func.func @transform_6(%arg0: i32, %arg1: i32) -> (i32, i32, i32) {
    %c0_i32 = arith.constant 0 : i32
    %c0_i32_0 = arith.constant 0 : i32
    %c0_i32_1 = arith.constant 0 : i32
    return %arg1, %c0_i32, %c0_i32_0 : i32, i32, i32
  }
  func.func @transform_7(%arg0: i32, %arg1: i32) -> (i32, i32, i32) {
    %c0_i32 = arith.constant 0 : i32
    %c0_i32_0 = arith.constant 0 : i32
    %c0_i32_1 = arith.constant 0 : i32
    return %arg1, %c0_i32, %c0_i32_0 : i32, i32, i32
  }
  func.func @transform_8(%arg0: i32, %arg1: i32) -> (i32, i32, i32) {
    %c0_i32 = arith.constant 0 : i32
    %c0_i32_0 = arith.constant 0 : i32
    %c0_i32_1 = arith.constant 0 : i32
    return %arg1, %c0_i32, %c0_i32_0 : i32, i32, i32
  }
  func.func @transform_9(%arg0: i32, %arg1: i32) -> (i32, i32, i32) {
    %c0_i32 = arith.constant 0 : i32
    %c0_i32_0 = arith.constant 0 : i32
    %c0_i32_1 = arith.constant 0 : i32
    return %arg1, %c0_i32, %c0_i32_0 : i32, i32, i32
  }
  func.func @transform_10(%arg0: i32, %arg1: i32) -> (i32, i32, i32) {
    %c0_i32 = arith.constant 0 : i32
    %c0_i32_0 = arith.constant 0 : i32
    %c0_i32_1 = arith.constant 0 : i32
    return %arg1, %c0_i32, %c0_i32_0 : i32, i32, i32
  }
  func.func @transform_11(%arg0: i32, %arg1: i32) -> (i32, i32, i32) {
    %c0_i32 = arith.constant 0 : i32
    %c0_i32_0 = arith.constant 0 : i32
    %c0_i32_1 = arith.constant 0 : i32
    return %arg1, %c0_i32, %c0_i32_0 : i32, i32, i32
  }
  func.func @transform_12(%arg0: i32, %arg1: i32) -> (i32, i32, i32) {
    %c0_i32 = arith.constant 0 : i32
    %c0_i32_0 = arith.constant 0 : i32
    %c0_i32_1 = arith.constant 0 : i32
    return %arg1, %c0_i32, %c0_i32_0 : i32, i32, i32
  }
  func.func @transform_13(%arg0: i32, %arg1: i32) -> (i32, i32, i32) {
    %c0_i32 = arith.constant 0 : i32
    %c0_i32_0 = arith.constant 0 : i32
    %c0_i32_1 = arith.constant 0 : i32
    return %arg0, %c0_i32, %c0_i32_0 : i32, i32, i32
  }
}

</mosaic_0001>

<bundles_post_ra>
// kernel: tpu_custom_call.1
= control target key start
LH: loop header
LB: loop body
LE: loop exit
PB: predicated region body
PF: predicated region fallthrough
CT: control target
= control target key end

     0   :  { %s3006_s0 = inlined_call_operand.hbm [shape: f32[2,8,32], index: 0, kind: input, shape index: {}]   ;;  %s3007_s1 = inlined_call_operand.hbm [shape: f32[2,1,32], index: 1, kind: input, shape index: {}]   ;;  %s3008_s2 = inlined_call_operand.hbm [shape: f32[2,1,32], index: 2, kind: input, shape index: {}]   ;;  %s3009_s3 = inlined_call_operand.vmem [shape: bf16[2,32,32], index: 3, kind: input, shape index: {}]   ;;  %s3010_s4 = inlined_call_operand.vmem [shape: f32[2,3,16], index: 4, kind: input, shape index: {}]   ;;  %s3011_s5 = inlined_call_operand.vmem [shape: f32[2,3,16], index: 5, kind: input, shape index: {}]   ;;  %s3012_s6 = inlined_call_operand.hbm [shape: bf16[2,32,32], index: 6, kind: input, shape index: {}]   ;;  %s3013_s7 = inlined_call_operand.hbm [shape: f32[2,1,32], index: 7, kind: input, shape index: {}]   ;;  %s3014_s8 = inlined_call_operand.hbm [shape: f32[2,1,32], index: 8, kind: input, shape index: {}]   ;;  %s3015_s9 = inlined_call_operand.hbm [shape: f32[2,1,32], index: 9, kind: input, shape index: {}]   ;;  %s3016_s10 = inlined_call_operand.vmem [shape: bf16[2,32,32], index: 10, kind: input, shape index: {}]   ;;  %s3017_s11 = inlined_call_operand.hbm [shape: bf16[2,32,32], index: 11, kind: input, shape index: {}]   ;;  %s3018_s12 = inlined_call_operand.hbm [shape: bf16[2,32,32], index: 12, kind: input, shape index: {}]   ;;  %s3019_s13 = inlined_call_operand.hbm [shape: f32[2,8,32], index: 13, kind: output, shape index: {}]  }
   0x1   :  { %3040 = sst [smem:[#allocation30_spill]] %s3007_s1 }
   0x2   :  { %3041 = sst [smem:[#allocation31_spill]] %s3009_s3 }
   0x3   :  { %3042 = sst [smem:[#allocation32_spill]] %s3010_s4 }
   0x4   :  { %3043 = sst [smem:[#allocation33_spill]] %s3011_s5 }
   0x5   :  { %3044 = sst [smem:[#allocation34_spill]] %s3012_s6 }
   0x6   :  { %3045 = sst [smem:[#allocation35_spill]] %s3014_s8 }
   0x7   :  { %3046 = sst [smem:[#allocation36_spill]] %s3016_s10 }
   0x8   :  { %3047 = sst [smem:[#allocation37_spill]] %s3017_s11 }
   0x9   :  { %3048 = sst [smem:[#allocation38_spill]] %s3019_s13 }
   0xa   :  { %18 = vsyncpa [#allocation3], 0 }
   0xb   :  { %19 = vsyncpa [#allocation6], 0 }
   0xc   :  { %21 = vsyncpa [#allocation6 + $0x1], 0 }
   0xd   :  { %22 = vsyncpa [#allocation9], 0 }
   0xe   :  { %24 = vsyncpa [#allocation9 + $0x1], 0 }
   0xf   :  { %25 = vsyncpa [#allocation12], 0 }
  0x10   :  { %27 = vsyncpa [#allocation12 + $0x1], 0 }
  0x11   :  { %28 = vsyncpa [#allocation15], 0 }
  0x12   :  { %30 = vsyncpa [#allocation15 + $0x1], 0 }
  0x13   :  { %31 = vsyncpa [#allocation4], 0  ;;  %s2426_s25 = smov 0   ;;  %s2428_s26 = smov 0  }
  0x14   :  { %s2430_s27 = smov 0   ;;  %s2432_s28 = smov 0  }
  0x15   :  { %s2434_s29 = smov 0   ;;  %s2436_s30 = smov 0  }
  0x16 LB: > { %3049 = sst [smem:[#allocation24_spill]] %s2322_s27  ;;  %s46_s14 = sadd.s32 1, %s2330_s29  ;;  %s2334_s30 = sphi %s2436_s30, %s37_s30   ;;  %s2330_s29 = sphi %s2434_s29, %s3100_s29   ;;  %s2326_s28 = sphi %s2432_s28, %s3096_s28   ;;  %s2322_s27 = sphi %s2430_s27, %s3095_s27   ;;  %s2318_s26 = sphi %s2428_s26, %s3099_s26   ;;  %s2314_s25 = sphi %s2426_s25, %s3098_s25  }
  0x17   : > { %3050 = sst [smem:[#allocation25_spill]] %s2326_s28  ;;  %s82_s15 = sadd.s32 1, %s2322_s27 }
  0x18   : > { %3051 = sst [smem:[#allocation26_spill]] %s2330_s29  ;;  %p47_p0 = scmp.ge.s32.totalorder %s46_s14, 2 }
  0x19   : > { %3052 = sst [smem:[#allocation27_spill]] %s2334_s30  ;;  %p89_p1 = scmp.ne.s32.totalorder %s2322_s27, %s2318_s26 }
  0x1a   : > { %p90_p2 = scmp.eq.s32.totalorder %s2334_s30, 0  ;;  %s3102_s14 = smov (%p47_p0, %s46_s14), 0 }
  0x1b   : > { %3053 = sst [smem:[#allocation28_spill]] %s3102_s14  ;;  %p1880_p4 = scmp.lt.s32.totalorder %s2334_s30, 2 }
  0x1c   : > { %p91_p3 = por %p90_p2, %p89_p1  ;;  %s79_s16 = ssub.s32 %s2330_s29, %s3102_s14 }
  0x1d   : > { %s2467_s17 = sand.u32 1, %s2334_s30   ;;  %p80_p5 = scmp.eq.s32.totalorder %s79_s16, 0 }
  0x1e   : > { %s2470_s18 = sand.u32 1, %s2322_s27   ;;  %s2473_s19 = sshll.u32 %s2330_s29, 4 }
  0x1f   : > { %s2476_s20 = scalar_select %p80_p5, %s2322_s27, %s82_s15  }
  0x20   : > { %s3055_s1 = sld [smem:[#allocation30_spill]]  ;;  %s450_s24 = scalar_lea.vmem [#allocation5], %s2470_s18 }
  0x21   : > { %3054 = sst [smem:[#allocation29_spill]] %s2476_s20  ;;  %s457_s16 = sshll.u32 %s450_s24, 4  ;;  %s2489_s16 = int_to_ptr.vmem [resolvable:$true] %s457_s16 }
  0x22   : > { %p2485_p6 = pnand %p1880_p4, %p91_p3  ;;  %s2492_s15 = sshll.u32 %s2470_s18, 4 }
  0x24   : > { %s3056_s14 = scalar_select %p2485_p6, 1, 0 }
  0x25   : > { %p2499_p8 = pneg %p2485_p6 }
  0x26   : > { %s2482_s23 = scalar_lea.hbm %s3055_s1, %s2473_s19  ;;  %s1975_s13 = scalar_lea.hbm %s3055_s1, 32 }
  0x27   : > { %s1970_s27 = scalar_lea.hbm %s2482_s23, 16  ;;  %p1976_p11 = scmp.lt.u32.totalorder %s2482_s23, %s3055_s1 }
  0x28   : > { %p1971_p7 = scmp.ne.s32.totalorder %s2482_s23, %s1970_s27  ;;  %p1977_p12 = scmp.lt.u32.totalorder %s1975_s13, %s1970_s27 }
  0x29   : > { %s3057_s21 = scalar_select %p2499_p8, 1, 0 }
  0x2a   : > { %p1973_p9 = pnand %p2499_p8, %p1971_p7  ;;  %p1978_p13 = por %p1977_p12, %p1976_p11 }
  0x2b   : > { %p1979_p0 = scmp.lt.u32.totalorder %s1970_s27, %s2482_s23 }
  0x2c   : > { %p1974_p10 = pneg %p1973_p9 }
  0x2d   : > { %p1980_p1 = por %p1979_p0, %p1978_p13 }
  0x2f   : > { %p1981_p2 = pnand %p1980_p1, %p1974_p10 }
  0x31   : > { %1984 = shalt.err (!%p1981_p2)
}
  0x32   : > { %s1985_s20 = scalar_lea.vmem %s2489_s16, 16  ;;  %s2336_s22 = smov [#allocation5]  }
  0x33   : > { %p1986_p3 = scmp.ne.s32.totalorder %s2489_s16, %s1985_s20  ;;  %s1990_s24 = sshll.u32 %s2336_s22, 4  ;;  %s1991_s24 = int_to_ptr.vmem [resolvable:$false] %s1990_s24 }
  0x34   : > { %s1992_s5 = scalar_lea.vmem %s1991_s24, 32  ;;  %p1993_p7 = scmp.lt.s32.totalorder %s2489_s16, %s1991_s24 }
  0x35   : > { %p1988_p4 = pnand %p1986_p3, %p2499_p8  ;;  %p1994_p9 = scmp.lt.s32.totalorder %s1992_s5, %s1985_s20 }
  0x37   : > { %p1989_p5 = pneg %p1988_p4  ;;  %p1995_p11 = por %p1994_p9, %p1993_p7 }
  0x39   : > { %p1996_p12 = pnand %p1995_p11, %p1989_p5 }
  0x3b   : > { %1999 = shalt.err (!%p1996_p12)
}
  0x3c   : > { %s3058_s10 = scalar_lea.sflag [#allocation6], %s2467_s17  ;;  %s2525_s13 = sshll.u32 %s2330_s29, 8 }
  0x3d   : > { %1857 = dma.hbm_to_vmem [thread:$0]  (!%p2485_p6), %s2482_s23, 16, %s2489_s16, %s3058_s10  }
  0x3e   : > { %s3059_s6 = sld [smem:[#allocation34_spill]]  ;;  %s507_s24 = scalar_lea.vmem [#allocation8], %s2492_s15 }
  0x3f   : > { %s514_s5 = sshll.u32 %s507_s24, 4  ;;  %s3024_s1 = scalar_lea.sflag [#allocation9], %s2467_s17  ;;  %s2534_s5 = int_to_ptr.vmem [resolvable:$true] %s514_s5 }
  0x44   : > { %s2531_s20 = scalar_lea.hbm %s3059_s6, %s2525_s13  ;;  %s2005_s10 = scalar_lea.hbm %s3059_s6, 512 }
  0x45   : > { %s2000_s4 = scalar_lea.hbm %s2531_s20, 256  ;;  %p2006_p1 = scmp.lt.u32.totalorder %s2531_s20, %s3059_s6 }
  0x46   : > { %p2001_p10 = scmp.ne.s32.totalorder %s2531_s20, %s2000_s4  ;;  %p2007_p2 = scmp.lt.u32.totalorder %s2005_s10, %s2000_s4 }
  0x47   : > { %p2009_p4 = scmp.lt.u32.totalorder %s2000_s4, %s2531_s20 }
  0x48   : > { %p2003_p13 = pnand %p2001_p10, %p2499_p8  ;;  %p2008_p3 = por %p2007_p2, %p2006_p1 }
  0x4a   : > { %p2004_p0 = pneg %p2003_p13  ;;  %p2010_p5 = por %p2009_p4, %p2008_p3 }
  0x4c   : > { %p2011_p7 = pnand %p2010_p5, %p2004_p0 }
  0x4e   : > { %2014 = shalt.err (!%p2011_p7)
}
  0x4f   : > { %s2015_s24 = scalar_lea.vmem %s2534_s5, 256  ;;  %s2337_s23 = smov [#allocation8]  }
  0x50   : > { %p2016_p9 = scmp.ne.s32.totalorder %s2534_s5, %s2015_s24  ;;  %s2020_s16 = sshll.u32 %s2337_s23, 4  ;;  %s2021_s16 = int_to_ptr.vmem [resolvable:$false] %s2020_s16 }
  0x51   : > { %s2022_s27 = scalar_lea.vmem %s2021_s16, 512  ;;  %p2023_p10 = scmp.lt.s32.totalorder %s2534_s5, %s2021_s16 }
  0x52   : > { %p2018_p11 = pnand %p2016_p9, %p2499_p8  ;;  %p2024_p13 = scmp.lt.s32.totalorder %s2022_s27, %s2015_s24 }
  0x54   : > { %p2019_p12 = pneg %p2018_p11  ;;  %p2025_p1 = por %p2024_p13, %p2023_p10 }
  0x56   : > { %p2026_p2 = pnand %p2025_p1, %p2019_p12 }
  0x58   : > { %2029 = shalt.err (!%p2026_p2)
}
  0x59   : > { %s3025_s4 = smov 64   ;;  %s3030_s10 = smov 4  }
  0x5a   : > { %1863 = dma.hbm_to_vmem [thread:$0]  (!%p2485_p6), %s2531_s20, 256, %s2534_s5, %s3024_s1, %s3025_s4, %s3025_s4, %s3030_s10  }
  0x5b   : > { %s3060_s8 = sld [smem:[#allocation35_spill]]  ;;  %s544_s16 = scalar_lea.vmem [#allocation11], %s2470_s18 }
  0x5c   : > { %s551_s27 = sshll.u32 %s544_s16, 4  ;;  %s3031_s6 = scalar_lea.sflag [#allocation12], %s2467_s17  ;;  %s552_s27 = int_to_ptr.vmem [resolvable:$true] %s551_s27 }
  0x61   : > { %s2567_s23 = scalar_lea.hbm %s3060_s8, %s2473_s19  ;;  %s2035_s5 = scalar_lea.hbm %s3060_s8, 32 }
  0x62   : > { %s2030_s29 = scalar_lea.hbm %s2567_s23, 16  ;;  %p2036_p5 = scmp.lt.u32.totalorder %s2567_s23, %s3060_s8 }
  0x63   : > { %p2031_p0 = scmp.ne.s32.totalorder %s2567_s23, %s2030_s29  ;;  %p2037_p7 = scmp.lt.u32.totalorder %s2035_s5, %s2030_s29 }
  0x64   : > { %p2039_p11 = scmp.lt.u32.totalorder %s2030_s29, %s2567_s23 }
  0x65   : > { %p2033_p3 = pnand %p2031_p0, %p2499_p8  ;;  %p2038_p9 = por %p2037_p7, %p2036_p5 }
  0x67   : > { %p2034_p4 = pneg %p2033_p3  ;;  %p2040_p12 = por %p2039_p11, %p2038_p9 }
  0x69   : > { %p2041_p10 = pnand %p2040_p12, %p2034_p4 }
  0x6b   : > { %2044 = shalt.err (!%p2041_p10)
}
  0x6c   : > { %s2045_s16 = scalar_lea.vmem %s552_s27, 16  ;;  %s2340_s1 = smov [#allocation11]  }
  0x6d   : > { %p2046_p13 = scmp.ne.s32.totalorder %s552_s27, %s2045_s16  ;;  %s2050_s4 = sshll.u32 %s2340_s1, 4  ;;  %s2051_s4 = int_to_ptr.vmem [resolvable:$false] %s2050_s4 }
  0x6e   : > { %s2052_s3 = scalar_lea.vmem %s2051_s4, 32  ;;  %p2053_p0 = scmp.lt.s32.totalorder %s552_s27, %s2051_s4 }
  0x6f   : > { %p2048_p1 = pnand %p2046_p13, %p2499_p8  ;;  %p2054_p3 = scmp.lt.s32.totalorder %s2052_s3, %s2045_s16 }
  0x71   : > { %p2049_p2 = pneg %p2048_p1  ;;  %p2055_p6 = por %p2054_p3, %p2053_p0 }
  0x73   : > { %p2056_p5 = pnand %p2055_p6, %p2049_p2 }
  0x75   : > { %2059 = shalt.err (!%p2056_p5)
}
  0x76   : > { %p3061_p7 = scmp.ne.s32.totalorder %s3056_s14, 0  ;;  %s3062_s11 = sld [smem:[#allocation37_spill]] }
  0x77   : > { %s587_s4 = scalar_lea.vmem [#allocation14], %s2492_s15  ;;  %s3029_s22 = scalar_lea.sflag [#allocation15], %s2467_s17 }
  0x78   : > { %1869 = dma.hbm_to_vmem [thread:$0]  (!%p3061_p7), %s2567_s23, 16, %s552_s27, %s3031_s6  }
  0x79   : > { %s594_s5 = sshll.u32 %s587_s4, 4  ;;  %s2597_s5 = int_to_ptr.vmem [resolvable:$true] %s594_s5 }
  0x7c   : > { %s2594_s1 = scalar_lea.hbm %s3062_s11, %s2525_s13  ;;  %s2065_s16 = scalar_lea.hbm %s3062_s11, 512 }
  0x7d   : > { %s2060_s24 = scalar_lea.hbm %s2594_s1, 256  ;;  %p2066_p11 = scmp.lt.u32.totalorder %s2594_s1, %s3062_s11 }
  0x7e   : > { %p2061_p6 = scmp.ne.s32.totalorder %s2594_s1, %s2060_s24  ;;  %p2067_p12 = scmp.lt.u32.totalorder %s2065_s16, %s2060_s24 }
  0x7f   : > { %p2069_p13 = scmp.lt.u32.totalorder %s2060_s24, %s2594_s1 }
  0x80   : > { %p2063_p4 = pnand %p2061_p6, %p2499_p8  ;;  %p2068_p10 = por %p2067_p12, %p2066_p11 }
  0x82   : > { %p2064_p9 = pneg %p2063_p4  ;;  %p2070_p1 = por %p2069_p13, %p2068_p10 }
  0x84   : > { %p2071_p2 = pnand %p2070_p1, %p2064_p9 }
  0x86   : > { %2074 = shalt.err (!%p2071_p2)
}
  0x87   : > { %s2075_s20 = scalar_lea.vmem %s2597_s5, 256  ;;  %s2341_s4 = smov [#allocation14]  }
  0x88   : > { %p2076_p0 = scmp.ne.s32.totalorder %s2597_s5, %s2075_s20  ;;  %s2080_s23 = sshll.u32 %s2341_s4, 4  ;;  %s2081_s23 = int_to_ptr.vmem [resolvable:$false] %s2080_s23 }
  0x89   : > { %s2082_s27 = scalar_lea.vmem %s2081_s23, 512  ;;  %p2083_p6 = scmp.lt.s32.totalorder %s2597_s5, %s2081_s23 }
  0x8a   : > { %p2078_p3 = pnand %p2076_p0, %p2499_p8  ;;  %p2084_p4 = scmp.lt.s32.totalorder %s2082_s27, %s2075_s20 }
  0x8c   : > { %p2079_p5 = pneg %p2078_p3  ;;  %p2085_p11 = por %p2084_p4, %p2083_p6 }
  0x8e   : > { %p2086_p12 = pnand %p2085_p11, %p2079_p5 }
  0x90   : > { %2089 = shalt.err (!%p2086_p12)
}
  0x91   : > { %s3063_s24 = smov 64   ;;  %s2627_s16 = sadd.s32 4294967295, %s2334_s30  }
  0x92   : > { %1875 = dma.hbm_to_vmem [thread:$0]  (!%p3061_p7), %s2594_s1, 256, %s2597_s5, %s3029_s22, %s3063_s24, %s3063_s24, %s3030_s10  }
  0x93   : > { %p95_p9 = scmp.ne.s32.totalorder %s2318_s26, %s2314_s25  ;;  %p3032_p10 = scmp.eq.s32.totalorder %s2627_s16, 0 }
  0x94   : > { %p1713_p13 = scmp.ge.s32.totalorder %s2334_s30, 1  ;;  %p418_p1 = scmp.lt.s32.totalorder %s2334_s30, 3 }
  0x95   : > { %p2636_p2 = por %p3032_p10, %p95_p9  ;;  %s2342_s1 = smov [#allocation2]  }
  0x96   : > { %p2640_p0 = pnand %p1713_p13, %p418_p1  ;;  %s433_s5 = sshll.u32 %s2342_s1, 4  ;;  %s434_s5 = int_to_ptr.vmem [resolvable:$true] %s433_s5 }
  0x97   : > { %s3064_s3 = scalar_select %p2636_p2, 1, 0 }
  0x98   : > { %s3065_s29 = scalar_select %p2640_p0, 1, 0 }
  0x99   : > { %p1850_p3 = pneg %p2640_p0  ;;  %s2656_s23 = scalar_lea.hbm %s3008_s2, %s2473_s19 }
  0x9a   : > { %s467_s27 = scalar_lea.vmem [#allocation7], %s2470_s18  ;;  %s2090_s6 = scalar_lea.hbm %s3006_s0, 256 }
  0x9b   : > { %p2648_p5 = pnand %p1850_p3, %p3032_p10  ;;  %s474_s22 = sshll.u32 %s467_s27, 4  ;;  %s2659_s22 = int_to_ptr.vmem [resolvable:$true] %s474_s22 }
  0x9c   : > { %p2091_p6 = scmp.ne.s32.totalorder %s3006_s0, %s2090_s6  ;;  %p2097_p9 = scmp.lt.u32.totalorder %s2090_s6, %s3006_s0 }
  0x9d   : > { %p2092_p4 = pneg %p2648_p5 }
  0x9f   : > { %p2093_p11 = pnand %p2092_p4, %p2091_p6 }
  0xa1   : > { %p2094_p12 = pneg %p2093_p11 }
  0xa3   : > { %p2099_p13 = pnand %p2097_p9, %p2094_p12 }
  0xa5   : > { %2102 = shalt.err (!%p2099_p13)
}
  0xa6   : > { %s2103_s27 = scalar_lea.vmem %s434_s5, 256  ;;  %p2111_p2 = scmp.lt.s32.totalorder %s434_s5, %s434_s5 }
  0xa7   : > { %p2104_p1 = scmp.ne.s32.totalorder %s434_s5, %s2103_s27  ;;  %p2112_p0 = scmp.lt.s32.totalorder %s2103_s27, %s2103_s27 }
  0xa9   : > { %p2106_p3 = pnand %p2104_p1, %p2092_p4  ;;  %p2113_p7 = por %p2112_p0, %p2111_p2 }
  0xab   : > { %p2107_p10 = pneg %p2106_p3 }
  0xad   : > { %p2114_p8 = pnand %p2113_p7, %p2107_p10 }
  0xaf   : > { %2117 = shalt.err (!%p2114_p8)
}
  0xb0   : > { %s2343_s8 = smov 128   ;;  %s2344_s11 = smov 8  }
  0xb1   : > { %1853 = dma.hbm_to_vmem [thread:$0]  (!%p2648_p5), %s3006_s0, 256, %s434_s5, [#allocation3], %s2343_s8, %s2343_s8, %s2344_s11  }
  0xb2   : > { %s2118_s1 = scalar_lea.hbm %s2656_s23, 16  ;;  %p3067_p4 = scmp.ne.s32.totalorder %s3057_s21, 0 }
  0xb3   : > { %p2119_p6 = scmp.ne.s32.totalorder %s2656_s23, %s2118_s1  ;;  %s2123_s27 = scalar_lea.hbm %s3008_s2, 32 }
  0xb4   : > { %p2124_p8 = scmp.lt.u32.totalorder %s2656_s23, %s3008_s2  ;;  %p2125_p7 = scmp.lt.u32.totalorder %s2123_s27, %s2118_s1 }
  0xb5   : > { %p2121_p11 = pnand %p2119_p6, %p3067_p4  ;;  %p2127_p0 = scmp.lt.u32.totalorder %s2118_s1, %s2656_s23 }
  0xb6   : > { %p2126_p10 = por %p2125_p7, %p2124_p8 }
  0xb7   : > { %p2122_p2 = pneg %p2121_p11 }
  0xb8   : > { %p2128_p12 = por %p2127_p0, %p2126_p10 }
  0xba   : > { %p2129_p9 = pnand %p2128_p12, %p2122_p2 }
  0xbc   : > { %2132 = shalt.err (!%p2129_p9)
}
  0xbd   : > { %s2133_s5 = scalar_lea.vmem %s2659_s22, 16  ;;  %s2345_s25 = smov [#allocation7]  }
  0xbe   : > { %p2134_p5 = scmp.ne.s32.totalorder %s2659_s22, %s2133_s5  ;;  %s2138_s8 = sshll.u32 %s2345_s25, 4  ;;  %s2139_s8 = int_to_ptr.vmem [resolvable:$false] %s2138_s8 }
  0xbf   : > { %s2140_s28 = scalar_lea.vmem %s2139_s8, 32  ;;  %p2141_p3 = scmp.lt.s32.totalorder %s2659_s22, %s2139_s8 }
  0xc0   : > { %p2136_p13 = pnand %p2134_p5, %p3067_p4  ;;  %p2142_p6 = scmp.lt.s32.totalorder %s2140_s28, %s2133_s5 }
  0xc2   : > { %p2137_p1 = pneg %p2136_p13  ;;  %p2143_p11 = por %p2142_p6, %p2141_p3 }
  0xc4   : > { %p2144_p8 = pnand %p2143_p11, %p2137_p1 }
  0xc6   : > { %2147 = shalt.err (!%p2144_p8)
}
  0xc7   : > { %p3068_p2 = scmp.ne.s32.totalorder %s3056_s14, 0  ;;  %s3069_s30 = scalar_lea.sflag [#allocation6], %s2467_s17 }
  0xc8   : > { %s2704_s10 = scalar_lea.hbm %s3013_s7, %s2473_s19  ;;  %s527_s1 = scalar_lea.vmem [#allocation10], %s2470_s18 }
  0xc9   : > { %1860 = dma.hbm_to_vmem [thread:$0]  (!%p3068_p2), %s2656_s23, 16, %s2659_s22, %s3069_s30  }
  0xca   : > { %s534_s20 = sshll.u32 %s527_s1, 4  ;;  %s2148_s4 = scalar_lea.hbm %s2704_s10, 16  ;;  %s535_s20 = int_to_ptr.vmem [resolvable:$true] %s534_s20 }
  0xcb   : > { %p2149_p7 = scmp.ne.s32.totalorder %s2704_s10, %s2148_s4  ;;  %s2153_s22 = scalar_lea.hbm %s3013_s7, 32 }
  0xcc   : > { %p2154_p12 = scmp.lt.u32.totalorder %s2704_s10, %s3013_s7  ;;  %p2155_p9 = scmp.lt.u32.totalorder %s2153_s22, %s2148_s4 }
  0xcd   : > { %p2151_p10 = pnand %p2149_p7, %p3067_p4  ;;  %p2157_p13 = scmp.lt.u32.totalorder %s2148_s4, %s2704_s10 }
  0xce   : > { %p2156_p5 = por %p2155_p9, %p2154_p12 }
  0xcf   : > { %p2152_p0 = pneg %p2151_p10 }
  0xd0   : > { %p2158_p1 = por %p2157_p13, %p2156_p5 }
  0xd2   : > { %p2159_p3 = pnand %p2158_p1, %p2152_p0 }
  0xd4   : > { %2162 = shalt.err (!%p2159_p3)
}
  0xd5   : > { %s2163_s8 = scalar_lea.vmem %s535_s20, 16  ;;  %s2346_s28 = smov [#allocation10]  }
  0xd6   : > { %p2164_p6 = scmp.ne.s32.totalorder %s535_s20, %s2163_s8  ;;  %s2168_s30 = sshll.u32 %s2346_s28, 4  ;;  %s2169_s30 = int_to_ptr.vmem [resolvable:$false] %s2168_s30 }
  0xd7   : > { %s2170_s11 = scalar_lea.vmem %s2169_s30, 32  ;;  %p2171_p7 = scmp.lt.s32.totalorder %s535_s20, %s2169_s30 }
  0xd8   : > { %p2166_p11 = pnand %p2164_p6, %p3067_p4  ;;  %p2172_p10 = scmp.lt.s32.totalorder %s2170_s11, %s2163_s8 }
  0xda   : > { %p2167_p8 = pneg %p2166_p11  ;;  %p2173_p2 = por %p2172_p10, %p2171_p7 }
  0xdc   : > { %p2174_p9 = pnand %p2173_p2, %p2167_p8 }
  0xde   : > { %2177 = shalt.err (!%p2174_p9)
}
  0xdf   : > { %p3070_p12 = scmp.ne.s32.totalorder %s3056_s14, 0  ;;  %s3071_s6 = scalar_lea.sflag [#allocation9], %s2467_s17 }
  0xe0   : > { %s2730_s27 = scalar_lea.hbm %s3015_s9, %s2473_s19  ;;  %s561_s5 = scalar_lea.vmem [#allocation13], %s2470_s18 }
  0xe1   : > { %1866 = dma.hbm_to_vmem [thread:$0]  (!%p3070_p12), %s2704_s10, 16, %s535_s20, %s3071_s6  }
  0xe2   : > { %s568_s22 = sshll.u32 %s561_s5, 4  ;;  %s2178_s23 = scalar_lea.hbm %s2730_s27, 16  ;;  %s569_s22 = int_to_ptr.vmem [resolvable:$true] %s568_s22 }
  0xe3   : > { %p2179_p2 = scmp.ne.s32.totalorder %s2730_s27, %s2178_s23  ;;  %s2183_s10 = scalar_lea.hbm %s3015_s9, 32 }
  0xe4   : > { %p2184_p13 = scmp.lt.u32.totalorder %s2730_s27, %s3015_s9  ;;  %p2185_p1 = scmp.lt.u32.totalorder %s2183_s10, %s2178_s23 }
  0xe5   : > { %p2181_p0 = pnand %p2179_p2, %p3067_p4  ;;  %p2187_p6 = scmp.lt.u32.totalorder %s2178_s23, %s2730_s27 }
  0xe6   : > { %p2186_p3 = por %p2185_p1, %p2184_p13 }
  0xe7   : > { %p2182_p5 = pneg %p2181_p0 }
  0xe8   : > { %p2188_p11 = por %p2187_p6, %p2186_p3 }
  0xea   : > { %p2189_p8 = pnand %p2188_p11, %p2182_p5 }
  0xec   : > { %2192 = shalt.err (!%p2189_p8)
}
  0xed   : > { %s2193_s18 = scalar_lea.vmem %s569_s22, 16  ;;  %s2347_s19 = smov [#allocation13]  }
  0xee   : > { %p2194_p7 = scmp.ne.s32.totalorder %s569_s22, %s2193_s18  ;;  %s2198_s30 = sshll.u32 %s2347_s19, 4  ;;  %s2199_s30 = int_to_ptr.vmem [resolvable:$false] %s2198_s30 }
  0xef   : > { %s2200_s11 = scalar_lea.vmem %s2199_s30, 32  ;;  %p2201_p2 = scmp.lt.s32.totalorder %s569_s22, %s2199_s30 }
  0xf0   : > { %p2196_p10 = pnand %p2194_p7, %p3067_p4  ;;  %p2202_p0 = scmp.lt.s32.totalorder %s2200_s11, %s2193_s18 }
  0xf2   : > { %p2197_p9 = pneg %p2196_p10  ;;  %p2203_p12 = por %p2202_p0, %p2201_p2 }
  0xf4   : > { %p2204_p1 = pnand %p2203_p12, %p2197_p9 }
  0xf6   : > { %2207 = shalt.err (!%p2204_p1)
}
  0xf7   : > { %p3072_p13 = scmp.ne.s32.totalorder %s3056_s14, 0  ;;  %s3073_s6 = scalar_lea.sflag [#allocation12], %s2467_s17 }
  0xf8   : > { %s2756_s5 = scalar_lea.hbm %s3018_s12, %s2525_s13  ;;  %s608_s23 = scalar_lea.vmem [#allocation16], %s2492_s15 }
  0xf9   : > { %1872 = dma.hbm_to_vmem [thread:$0]  (!%p3072_p13), %s2730_s27, 16, %s569_s22, %s3073_s6  }
  0xfa   : > { %s615_s25 = sshll.u32 %s608_s23, 4  ;;  %s2208_s8 = scalar_lea.hbm %s2756_s5, 256  ;;  %s2759_s25 = int_to_ptr.vmem [resolvable:$true] %s615_s25 }
  0xfb   : > { %p2209_p12 = scmp.ne.s32.totalorder %s2756_s5, %s2208_s8  ;;  %s2213_s22 = scalar_lea.hbm %s3018_s12, 512 }
  0xfc   : > { %p2214_p6 = scmp.lt.u32.totalorder %s2756_s5, %s3018_s12  ;;  %p2215_p11 = scmp.lt.u32.totalorder %s2213_s22, %s2208_s8 }
  0xfd   : > { %p2211_p5 = pnand %p2209_p12, %p3067_p4  ;;  %p2217_p7 = scmp.lt.u32.totalorder %s2208_s8, %s2756_s5 }
  0xfe   : > { %p2216_p8 = por %p2215_p11, %p2214_p6 }
  0xff   : > { %p2212_p3 = pneg %p2211_p5 }
 0x100   : > { %p2218_p10 = por %p2217_p7, %p2216_p8 }
 0x102   : > { %p2219_p9 = pnand %p2218_p10, %p2212_p3 }
 0x104   : > { %2222 = shalt.err (!%p2219_p9)
}
 0x105   : > { %s2223_s15 = scalar_lea.vmem %s2759_s25, 256  ;;  %s2348_s28 = smov [#allocation16]  }
 0x106   : > { %p2224_p2 = scmp.ne.s32.totalorder %s2759_s25, %s2223_s15  ;;  %s2228_s18 = sshll.u32 %s2348_s28, 4  ;;  %s2229_s18 = int_to_ptr.vmem [resolvable:$false] %s2228_s18 }
 0x107   : > { %s2230_s19 = scalar_lea.vmem %s2229_s18, 512  ;;  %p2231_p12 = scmp.lt.s32.totalorder %s2759_s25, %s2229_s18 }
 0x108   : > { %p2226_p0 = pnand %p2224_p2, %p3067_p4  ;;  %p2232_p5 = scmp.lt.s32.totalorder %s2230_s19, %s2223_s15 }
 0x10a   : > { %p2227_p1 = pneg %p2226_p0  ;;  %p2233_p6 = por %p2232_p5, %p2231_p12 }
 0x10c   : > { %p2234_p11 = pnand %p2233_p6, %p2227_p1 }
 0x10e   : > { %2237 = shalt.err (!%p2234_p11)
}
 0x10f   : > { %s3074_s30 = smov 4   ;;  %s3075_s11 = scalar_lea.sflag [#allocation15], %s2467_s17 }
 0x110   : > { %1878 = dma.hbm_to_vmem [thread:$0]  (!%p3072_p13), %s2756_s5, 256, %s2759_s25, %s3075_s11, %s3063_s24, %s3063_s24, %s3074_s30  }
 0x111   : > { %p3076_p4 = scmp.ne.s32.totalorder %s3065_s29, 0 }
 0x112   : > { %p3077_p3 = scmp.eq.s32.totalorder (!%p3076_p4), %s2627_s16, 0 }
 0x113   : > { %627 = sbr.rel (%p3076_p4) target bundleno = 2618 (0xa3a), region = 72 }
 0x11a   : > { %2289 = dma.done.wait (%p3077_p3), [#allocation3], 256   ;;  %p3078_p8 = pmov %p3077_p3 }
 0x11b   : > { %s633_s14 = sand.u32 1, %s2627_s16   ;;  %s2795_s21 = sand.u32 1, %s2318_s26  }
 0x11c   : > { %2291 = vsyncadd (%p3078_p8), [#allocation3], 4294967040  ;;  %s634_s17 = scalar_lea.sflag [#allocation6], %s633_s14  ;;  %s636_s6 = scalar_lea.vmem [#allocation5], %s2795_s21 }
 0x11d   : > { %p3079_p7 = scmp.ne.s32.totalorder %s3064_s3, 0 }
 0x11f   : > { %2293 = dma.done.wait (%p3079_p7), %s634_s17, 32  }
 0x120   : > { %2295 = vsyncadd (%p3079_p7), %s634_s17, 4294967264  ;;  %s2803_s24 = sshll.u32 %s2795_s21, 4  ;;  %s644_s29 = scalar_lea.vmem [#allocation7], %s2795_s21 }
 0x121   : > { %s650_s1 = scalar_lea.sflag [#allocation9], %s633_s14 }
 0x122   : > { %2297 = dma.done.wait (%p3079_p7), %s650_s1, 272  }
 0x123   : > { %2299 = vsyncadd (%p3079_p7), %s650_s1, 4294967024  ;;  %s667_s23 = scalar_lea.sflag [#allocation12], %s633_s14 }
 0x124   : > { %2301 = dma.done.wait (%p3079_p7), %s667_s23, 32  }
 0x125   : > { %2303 = vsyncadd (%p3079_p7), %s667_s23, 4294967264  ;;  %s683_s10 = scalar_lea.sflag [#allocation15], %s633_s14 }
 0x126   : > { %2305 = dma.done.wait (%p3079_p7), %s683_s10, 512  }
 0x127   : > { %2307 = vsyncadd (%p3079_p7), %s683_s10, 4294966784  ;;  %s3080_s22 = sld [smem:[#allocation25_spill]]  ;;  %s3081_s19 = sld [smem:[#allocation31_spill]] }
 0x128   : > { %s3082_s17 = sld [smem:[#allocation32_spill]]  ;;  %s3083_s10 = sld [smem:[#allocation33_spill]] }
 0x129   : > { %s3084_s5 = sld [smem:[#allocation36_spill]] }
 0x12d   : > { %p782_p13 = scmp.lt.s32.totalorder %s3080_s22, 1  ;;  %p1741_p10 = scmp.ne.s32.totalorder %s3080_s22, 0 }
 0x12e   : > { %v806_v0 = vld [vmem:[#allocation2] sm:$0xff] (!%p1741_p10)  ;;  %vm808_vm0 = vcmask (!%p1741_p10), 261120   ;;  %v807_v1 = vld [vmem:[#allocation2 + $0x8] sm:$0xff] (!%p1741_p10) }
 0x12f   : > { %s783_s20 = scalar_select %p782_p13, %s3080_s22, 1 }
 0x130   : > { %805 = sbr.rel (%p1741_p10) target bundleno = 311 (0x137), region = 112  ;;  %809 = vst.msk [vmem:[#allocation17] sm:$0xff] (!%p1741_p10), %vm808_vm0, %v806_v0  ;;  %810 = vst.msk [vmem:[#allocation17 + $0x8] sm:$0xff] (!%p1741_p10), %vm808_vm0, %v807_v1 }
 0x131   : > { %s1769_s13 = sshll.u32 %s783_s20, 4  ;;  %s1737_s15 = sshll.u32 %s783_s20, 2 }
 0x132   : > { %s2828_s30 = scalar_lea.vmem %s3081_s19, %s1769_s13  ;;  %s2833_s1 = scalar_lea.vmem %s3082_s17, %s1737_s15 }
 0x133   : > { %s2838_s8 = scalar_lea.vmem %s3083_s10, %s1737_s15  ;;  %s2843_s4 = scalar_lea.vmem %s3084_s5, %s1769_s13 }
 0x134   : > { %s695_s20 = scalar_lea.vmem [#allocation16], %s2803_s24 }
 0x137 PF: > { %v811_v2 = vld [vmem:[#allocation17] sm:$0xff]  ;;  %vm815_vm1 = vcmask 261120   ;;  %v812_v3 = vld [vmem:[#allocation17 + $0x8] sm:$0xff]  ;;  %v2349_v17 = vmov 0.0   ;;  %vm2350_vm2 = vmmov 0   ;;  %v939_v36 = vlaneseq  ;;  %s3085_s5 = scalar_lea.vmem [#allocation8], %s2803_s24 }
 0x138   : > { %v816_v4 = vsel %vm815_vm1, %v811_v2, 0.0  ;;  %v819_v5 = vsel %vm815_vm1, %v812_v3, 0.0  ;;  %v1944_v16 = vld [vmem:[%s2828_s30] sm:$0xff]   ;;  %1786 = vmatprep.subr.bf16.mxu0 %v2349_v17  ;;  %1794 = vmatprep.subr.bf16.mxu1 %v2349_v17  ;;  %v1945_v18 = vld [vmem:[%s2828_s30 + $0x8] sm:$0xff]   ;;  %vm928_vm3 = vcmask 1040384   ;;  %vm985_vm4 = vcmask 1041408   ;;  %s3086_s25 = smov %s3085_s5 }
 0x139   : > { %817 = vadd.xlane.f32.xlu0 %v816_v4  ;;  %1787 = vmatpush3.bf16.msra.mxu0 %v1944_v16  ;;  %v1742_v27 = vld [vmem:[%s636_s6] ss:$0 sm:$0xff]  ;;  %v2874_v37 = vshrl.u32 %v939_v36, 7  ;;  %s2351_s6 = smov 112   ;;  %vm1046_vm5 = vcmask 1043456   ;;  %vm1101_vm6 = vcmask 130048  }
 0x13a   : > { %1790 = vmatprep.mubr.msk.bf16.mxu0 %vm2350_vm2, %v2349_v17  ;;  %1788 = vmatprep.subr.bf16.mxu0 %v2349_v17  ;;  %v1743_v31 = vld [vmem:[%s644_s29] ss:$0 sm:$0xff]  ;;  %s2352_s29 = smov 16   ;;  %s3088_s27 = scalar_lea.vmem [#allocation14], %s2803_s24 }
 0x13b   : > { %1798 = vmatprep.mubr.msk.bf16.mxu1 %vm2350_vm2, %v2349_v17  ;;  %v941_v38 = vsub.s32 0, %v2874_v37  ;;  %v2878_v39 = vld [vmem:[%s2833_s1] sm:$0x7]  ;;  %v1002_v58 = vsub.s32 1, %v2874_v37  ;;  %s3089_s22 = smov %s3088_s27  ;;  %s3090_s13 = scalar_lea.vmem [#allocation11], %s2795_s21 }
 0x13c   : > { %v2881_v40 = vld [vmem:[%s2838_s8] sm:$0x7]  ;;  %s3087_s8 = scalar_lea.vmem [#allocation10], %s2795_s21  ;;  %p1882_p9 = scmp.eq.s32.totalorder %s2627_s16, 1 }
 0x13d   : > { %820 = vadd.xlane.f32.xlu0 %v819_v5  ;;  %1789 = vmatpush3.bf16.msra.mxu0 %v1945_v18  ;;  %v942_v42 = vrot.slane %v2878_v39, %v941_v38  ;;  %v950_v43 = vrot.slane %v2881_v40, %v941_v38  ;;  %v1003_v1 = vrot.slane %v2878_v39, %v1002_v58 }
 0x13e   : > { %1802 = vmatprep.subr.bf16.mxu0 %v2349_v17 }
 0x1c6   : > { %v818_v6 = vpop.xlane.xlu0 %817 }
 0x1c7   : > { %v823_v7 = vmul.f32 0.03125, %v818_v6 }
 0x1c9   : > { %v825_v8 = vsub.f32 %v811_v2, %v823_v7 }
 0x1ca   : > { %v821_v9 = vpop.xlane.xlu0 %820 }
 0x1cb   : > { %v824_v10 = vmul.f32 0.03125, %v821_v9  ;;  %v827_v11 = vmul.f32 %v825_v8, %v825_v8 }
 0x1cd   : > { %v826_v12 = vsub.f32 %v812_v3, %v824_v10  ;;  %v829_v13 = vsel %vm815_vm1, %v827_v11, 0.0 }
 0x1ce   : > { %830 = vadd.xlane.f32.xlu1 %v829_v13 }
 0x1cf   : > { %v828_v14 = vmul.f32 %v826_v12, %v826_v12 }
 0x1d1   : > { %v832_v15 = vsel %vm815_vm1, %v828_v14, 0.0 }
 0x1d2   : > { %833 = vadd.xlane.f32.xlu1 %v832_v15 }
 0x25b   : > { %v831_v19 = vpop.xlane.xlu1 %830 }
 0x25c   : > { %v835_v20 = vmul.f32 0.03125, %v831_v19 }
 0x25e   : > { %v837_v21 = vadd.f32 1e-05, %v835_v20 }
 0x25f   : > { %v834_v22 = vpop.xlane.xlu1 %833 }
 0x260   : > { %1954 = vrsqrt.f32 %v837_v21  ;;  %v836_v23 = vmul.f32 0.03125, %v834_v22 }
 0x262   : > { %v838_v24 = vadd.f32 1e-05, %v836_v23 }
 0x264   : > { %1956 = vrsqrt.f32 %v838_v24  ;;  %v1011_v24 = vrot.slane %v2881_v40, %v1002_v58 }
 0x26a   : > { %v1955_v25 = vpop.eup %1954 }
 0x26b   : > { %v841_v26 = vmul.f32 %v1955_v25, %v825_v8 }
 0x26d   : > { %v849_v30 = vmul.f32 %v1742_v27, %v841_v26 }
 0x26e   : > { %v1957_v28 = vpop.eup %1956 }
 0x26f   : > { %v842_v29 = vmul.f32 %v1957_v28, %v826_v12  ;;  %v2865_v33 = vadd.f32 %v1743_v31, %v849_v30 }
 0x271   : > { %v850_v32 = vmul.f32 %v1742_v27, %v842_v29  ;;  %v1063_v27 = vsub.s32 2, %v2874_v37 }
 0x273   : > { %v2867_v34 = vadd.f32 %v1743_v31, %v850_v32  ;;  %v1064_v31 = vrot.slane %v2878_v39, %v1063_v27 }
 0x275   : > { %v859_v35 = vpack.c.bf16 %v2867_v34, %v2865_v33 }
 0x277   : > { %1791 = vmatmul.mubr.msk.bf16.vlgmr.msra.gmra.mrb[0].mxu0 %vm815_vm1, %v859_v35 }
 0x278   : > { %1806 = vmatprep.mubr.msk.bf16.mxu0 %vm2350_vm2, %v2349_v17 }
 0x34a   : > { %v913_v41 = vpop.f32.mrb[0].mxu0 }
 0x34b   : > { %v924_v44 = vrot.slane %v913_v41, 7  ;;  %v1792_v45 = vpop.f32.mrb[1].mxu0 }
 0x34c   : > { %v916_v46 = vpop.f32.mrb[2].mxu0 }
 0x34d   : > { %v929_v47 = vsel %vm928_vm3, 0.0, %v924_v44  ;;  %v925_v48 = vrot.slane %v916_v46, 7  ;;  %931 = vrot.lane.b32.xlu0 %v924_v44, %s2351_s6  ;;  %v1793_v49 = vpop.f32.mrb[3].mxu0 }
 0x34e   : > { %v943_v50 = vmul.f32 %v942_v42, %v929_v47  ;;  %v967_v51 = vmul.f32 %v950_v43, %v929_v47 }
 0x34f   : > { %v930_v52 = vsel %vm928_vm3, 0.0, %v925_v48  ;;  %933 = vrot.lane.b32.xlu1 %v925_v48, %s2351_s6 }
 0x350   : > { %v945_v53 = vadd.f32 %v943_v50, %v913_v41  ;;  %v944_v54 = vmul.f32 %v942_v42, %v930_v52  ;;  %v968_v8 = vmul.f32 %v950_v43, %v930_v52 }
 0x351   : > { %971 = vrot.lane.b32.xlu0 %v967_v51, %s2352_s29 }
 0x352   : > { %v946_v55 = vadd.f32 %v944_v54, %v916_v46 }
 0x3bf   : > { %v932_v56 = vpop.permute.xlu0 %931 }
 0x3c0   : > { %v937_v57 = vsel %vm928_vm3, 0.0, %v932_v56 }
 0x3c1   : > { %v951_v59 = vmul.f32 %v950_v43, %v937_v57  ;;  %v955_v60 = vmul.f32 %v942_v42, %v937_v57  ;;  %v934_v61 = vpop.permute.xlu1 %933 }
 0x3c2   : > { %v938_v62 = vsel %vm928_vm3, 0.0, %v934_v61  ;;  %v1072_v61 = vrot.slane %v2881_v40, %v1063_v27 }
 0x3c3   : > { %v953_v63 = vsub.f32 %v945_v53, %v951_v59  ;;  %v952_v0 = vmul.f32 %v950_v43, %v938_v62  ;;  %959 = vrot.lane.b32.xlu1 %v955_v60, %s2352_s29  ;;  %v956_v4 = vmul.f32 %v942_v42, %v938_v62  ;;  %v972_v15 = vpop.permute.xlu0 %971  ;;  %v1946_v60 = vld [vmem:[%s3085_s5] sm:$0xff]  }
 0x3c4   : > { %1795 = vmatpush3.bf16.msra.mxu1 %v1946_v60 }
 0x3c5   : > { %v981_v2 = vrot.slane %v953_v63, 6  ;;  %v954_v3 = vsub.f32 %v946_v55, %v952_v0  ;;  %1796 = vmatprep.subr.bf16.mxu1 %v2349_v17  ;;  %v1947_v0 = vld [vmem:[%s3086_s25 + $0x8] sm:$0xff]  }
 0x3c7   : > { %v982_v5 = vrot.slane %v954_v3, 6  ;;  %961 = vrot.lane.b32.xlu1 %v956_v4, %s2352_s29  ;;  %v986_v6 = vsel %vm985_vm4, 0.0, %v981_v2 }
 0x3c8   : > { %v1004_v7 = vmul.f32 %v1003_v1, %v986_v6  ;;  %v1028_v36 = vmul.f32 %v1011_v24, %v986_v6  ;;  %1797 = vmatpush3.bf16.msra.mxu1 %v1947_v0  ;;  %v1948_v0 = vld [vmem:[%s3088_s27] sm:$0xff]  }
 0x3c9   : > { %v987_v9 = vsel %vm985_vm4, 0.0, %v982_v5  ;;  %1810 = vmatprep.subr.bf16.mxu1 %v2349_v17 }
 0x3ca   : > { %v1006_v10 = vadd.f32 %v1004_v7, %v953_v63  ;;  %v1005_v11 = vmul.f32 %v1003_v1, %v987_v9  ;;  %v1029_v47 = vmul.f32 %v1011_v24, %v987_v9 }
 0x3cb   : > { %973 = vrot.lane.b32.xlu1 %v968_v8, %s2352_s29 }
 0x3cc   : > { %v1007_v12 = vadd.f32 %v1005_v11, %v954_v3 }
 0x435   : > { %v960_v13 = vpop.permute.xlu1 %959 }
 0x436   : > { %v965_v14 = vadd.f32 %v960_v13, %v913_v41 }
 0x438   : > { %v977_v16 = vadd.f32 %v972_v15, %v965_v14 }
 0x439   : > { %v962_v18 = vpop.permute.xlu1 %961 }
 0x43a   : > { %v990_v19 = vrot.slane %v977_v16, 6  ;;  %v966_v20 = vadd.f32 %v962_v18, %v916_v46 }
 0x43c   : > { %992 = vrot.lane.b32.xlu0 %v990_v19, %s2351_s6 }
 0x43d   : > { %v974_v21 = vpop.permute.xlu1 %973 }
 0x43e   : > { %v978_v22 = vadd.f32 %v974_v21, %v966_v20 }
 0x440   : > { %v991_v23 = vrot.slane %v978_v22, 6 }
 0x442   : > { %994 = vrot.lane.b32.xlu1 %v991_v23, %s2351_s6 }
 0x4ae   : > { %v993_v25 = vpop.permute.xlu0 %992 }
 0x4af   : > { %v998_v26 = vsel %vm985_vm4, 0.0, %v993_v25 }
 0x4b0   : > { %v1012_v28 = vmul.f32 %v1011_v24, %v998_v26  ;;  %v1016_v29 = vmul.f32 %v1003_v1, %v998_v26 }
 0x4b2   : > { %v1014_v30 = vsub.f32 %v1006_v10, %v1012_v28  ;;  %1020 = vrot.lane.b32.xlu0 %v1016_v29, %s2352_s29 }
 0x4b4   : > { %v1042_v32 = vrot.slane %v1014_v30, 4  ;;  %v995_v35 = vpop.permute.xlu1 %994 }
 0x4b5   : > { %v999_v38 = vsel %vm985_vm4, 0.0, %v995_v35 }
 0x4b6   : > { %v1013_v41 = vmul.f32 %v1011_v24, %v999_v38  ;;  %v1017_v42 = vmul.f32 %v1003_v1, %v999_v38  ;;  %1032 = vrot.lane.b32.xlu0 %v1028_v36, %s2352_s29  ;;  %v1047_v43 = vsel %vm1046_vm5, 0.0, %v1042_v32 }
 0x4b7   : > { %v1065_v37 = vmul.f32 %v1064_v31, %v1047_v43  ;;  %v1089_v5 = vmul.f32 %v1072_v61, %v1047_v43 }
 0x4b8   : > { %v1015_v44 = vsub.f32 %v1007_v12, %v1013_v41  ;;  %1022 = vrot.lane.b32.xlu1 %v1017_v42, %s2352_s29 }
 0x4b9   : > { %v1067_v45 = vadd.f32 %v1065_v37, %v1014_v30 }
 0x4ba   : > { %v1043_v46 = vrot.slane %v1015_v44, 4 }
 0x4bc   : > { %1034 = vrot.lane.b32.xlu1 %v1029_v47, %s2352_s29  ;;  %v1048_v39 = vsel %vm1046_vm5, 0.0, %v1043_v46 }
 0x4bd   : > { %v1066_v48 = vmul.f32 %v1064_v31, %v1048_v39  ;;  %v1090_v9 = vmul.f32 %v1072_v61, %v1048_v39 }
 0x4bf   : > { %v1068_v49 = vadd.f32 %v1066_v48, %v1015_v44 }
 0x524   : > { %v1021_v50 = vpop.permute.xlu0 %1020 }
 0x525   : > { %v1026_v51 = vadd.f32 %v1021_v50, %v977_v16 }
 0x528   : > { %v1033_v52 = vpop.permute.xlu0 %1032 }
 0x529   : > { %v1038_v53 = vadd.f32 %v1033_v52, %v1026_v51 }
 0x52a   : > { %v1023_v54 = vpop.permute.xlu1 %1022 }
 0x52b   : > { %v1051_v55 = vrot.slane %v1038_v53, 4  ;;  %v1027_v56 = vadd.f32 %v1023_v54, %v978_v22  ;;  %v1750_v22 = vld [vmem:[%s3087_s8] ss:$0 sm:$0xff] }
 0x52c   : > { %v1172_v23 = vmul.f32 %v1750_v22, %v2865_v33  ;;  %v1173_v27 = vmul.f32 %v1750_v22, %v2867_v34  ;;  %v1953_v22 = vld [vmem:[%s695_s20 + $0x8] sm:$0xff]  }
 0x52d   : > { %1053 = vrot.lane.b32.xlu0 %v1051_v55, %s2351_s6 }
 0x52e   : > { %v1035_v57 = vpop.permute.xlu1 %1034 }
 0x52f   : > { %v1039_v58 = vadd.f32 %v1035_v57, %v1027_v56 }
 0x531   : > { %v1052_v59 = vrot.slane %v1039_v58, 4 }
 0x533   : > { %1055 = vrot.lane.b32.xlu1 %v1052_v59, %s2351_s6 }
 0x59f   : > { %v1054_v62 = vpop.permute.xlu0 %1053 }
 0x5a0   : > { %v1059_v63 = vsel %vm1046_vm5, 0.0, %v1054_v62 }
 0x5a1   : > { %v1073_v1 = vmul.f32 %v1072_v61, %v1059_v63  ;;  %v1077_v2 = vmul.f32 %v1064_v31, %v1059_v63 }
 0x5a3   : > { %v1075_v3 = vsub.f32 %v1067_v45, %v1073_v1  ;;  %1081 = vrot.lane.b32.xlu0 %v1077_v2, %s2352_s29  ;;  %v1949_v1 = vld [vmem:[%s2843_s4] sm:$0xff]   ;;  %v1950_v2 = vld [vmem:[%s3089_s22 + $0x8] sm:$0xff]  }
 0x5a4   : > { %1803 = vmatpush3.bf16.msra.mxu0 %v1949_v1 }
 0x5a5   : > { %v1056_v4 = vpop.permute.xlu1 %1055  ;;  %1804 = vmatprep.subr.bf16.mxu0 %v2349_v17 }
 0x5a6   : > { %v1060_v6 = vsel %vm1046_vm5, 0.0, %v1056_v4 }
 0x5a7   : > { %v1074_v40 = vmul.f32 %v1072_v61, %v1060_v6  ;;  %v1078_v7 = vmul.f32 %v1064_v31, %v1060_v6  ;;  %1093 = vrot.lane.b32.xlu0 %v1089_v5, %s2352_s29 }
 0x5a9   : > { %v1076_v8 = vsub.f32 %v1068_v49, %v1074_v40  ;;  %1083 = vrot.lane.b32.xlu1 %v1078_v7, %s2352_s29 }
 0x5ad   : > { %1095 = vrot.lane.b32.xlu1 %v1090_v9, %s2352_s29 }
 0x615   : > { %v1082_v10 = vpop.permute.xlu0 %1081 }
 0x616   : > { %v1087_v13 = vadd.f32 %v1082_v10, %v1038_v53 }
 0x619   : > { %v1094_v11 = vpop.permute.xlu0 %1093 }
 0x61a   : > { %v1099_v14 = vadd.f32 %v1094_v11, %v1087_v13  ;;  %v1751_v11 = vld [vmem:[%s3090_s13] ss:$0 sm:$0xff] }
 0x61b   : > { %v1084_v12 = vpop.permute.xlu1 %1083 }
 0x61c   : > { %v1088_v15 = vadd.f32 %v1084_v12, %v1039_v58  ;;  %v1102_v19 = vsel %vm1101_vm6, %v1075_v3, %v1099_v14  ;;  %v1951_v3 = vld [vmem:[%s2843_s4 + $0x8] sm:$0xff]   ;;  %s3091_s4 = scalar_lea.vmem [#allocation13], %s2795_s21  ;;  %s2353_s21 = smov [#allocation17]  }
 0x61d   : > { %1805 = vmatpush3.bf16.msra.mxu0 %v1951_v3  ;;  %s1452_s24 = sshll.u32 %s2353_s21, 4  ;;  %s1453_s24 = int_to_ptr.vmem [resolvable:$true] %s1452_s24 }
 0x61e   : > { %1818 = vmatprep.subr.bf16.mxu0 %v2349_v17  ;;  %s2238_s15 = scalar_lea.vmem %s1453_s24, 256  ;;  %p2245_p12 = scmp.lt.s32.totalorder %s1453_s24, %s1453_s24 }
 0x61f   : > { %v1096_v16 = vpop.permute.xlu1 %1095  ;;  %p2239_p2 = scmp.ne.s32.totalorder %s1453_s24, %s2238_s15  ;;  %p2246_p5 = scmp.lt.s32.totalorder %s2238_s15, %s2238_s15 }
 0x620   : > { %v1100_v18 = vadd.f32 %v1096_v16, %v1088_v15  ;;  %v1752_v15 = vld [vmem:[%s3091_s4] ss:$0 sm:$0xff] }
 0x621   : > { %p2240_p0 = pnand %p2239_p2, %p1882_p9  ;;  %p2247_p6 = por %p2246_p5, %p2245_p12 }
 0x622   : > { %v1103_v20 = vsel %vm1101_vm6, %v1076_v8, %v1100_v18 }
 0x623   : > { %v1104_v21 = vpack.c.bf16 %v1103_v20, %v1102_v19  ;;  %p2241_p1 = pneg %p2240_p0 }
 0x625   : > { %1799 = vmatmul.mubr.msk.bf16.vlgmr.msra.gmra.mrb[0].mxu1 %vm815_vm1, %v1104_v21  ;;  %v1952_v21 = vld [vmem:[%s695_s20] sm:$0xff]   ;;  %p2248_p11 = pnand %p2247_p6, %p2241_p1 }
 0x626   : > { %1814 = vmatprep.mubr.msk.bf16.mxu1 %vm2350_vm2, %v2349_v17  ;;  %1811 = vmatpush3.bf16.msra.mxu1 %v1948_v0 }
 0x627   : > { %1812 = vmatprep.subr.bf16.mxu1 %v2349_v17 }
 0x62a   : > { %1813 = vmatpush3.bf16.msra.mxu1 %v1950_v2 }
 0x6f8   : > { %v1158_v24 = vpop.f32.mrb[0].mxu1 }
 0x6f9   : > { %v1174_v25 = vadd.f32 %v1172_v23, %v1158_v24  ;;  %v1800_v26 = vpop.f32.mrb[1].mxu1 }
 0x6fa   : > { %v1161_v28 = vpop.f32.mrb[2].mxu1 }
 0x6fb   : > { %v1176_v29 = vmul.f32 %v1174_v25, %v1174_v25  ;;  %v1175_v30 = vadd.f32 %v1173_v27, %v1161_v28  ;;  %v1801_v31 = vpop.f32.mrb[3].mxu1 }
 0x6fd   : > { %v1178_v32 = vmul.f32 %v1176_v29, %v1174_v25  ;;  %v1177_v35 = vmul.f32 %v1175_v30, %v1175_v30 }
 0x6ff   : > { %v1180_v36 = vmul.f32 0.044715, %v1178_v32  ;;  %v1179_v38 = vmul.f32 %v1177_v35, %v1175_v30 }
 0x701   : > { %v1182_v41 = vadd.f32 %v1180_v36, %v1174_v25  ;;  %v1181_v42 = vmul.f32 0.044715, %v1179_v38 }
 0x703   : > { %v1184_v43 = vmul.f32 0.7978846, %v1182_v41  ;;  %v1183_v37 = vadd.f32 %v1181_v42, %v1175_v30 }
 0x705   : > { %1958 = vtanh.f32 %v1184_v43  ;;  %v1185_v44 = vmul.f32 0.7978846, %v1183_v37 }
 0x707   : > { %1960 = vtanh.f32 %v1185_v44 }
 0x70f   : > { %v1959_v45 = vpop.eup %1958 }
 0x710   : > { %v1188_v46 = vadd.f32 1.0, %v1959_v45 }
 0x711   : > { %v1961_v47 = vpop.eup %1960 }
 0x712   : > { %v1190_v39 = vmul.f32 0.5, %v1188_v46  ;;  %v1189_v48 = vadd.f32 1.0, %v1961_v47 }
 0x714   : > { %v1192_v49 = vmul.f32 %v1190_v39, %v1174_v25  ;;  %v1191_v50 = vmul.f32 0.5, %v1189_v48 }
 0x716   : > { %v1194_v51 = vadd.f32 %v1192_v49, %v2865_v33  ;;  %v1193_v52 = vmul.f32 %v1191_v50, %v1175_v30 }
 0x718   : > { %v1198_v53 = vsel %vm815_vm1, %v1194_v51, 0.0  ;;  %v1195_v54 = vadd.f32 %v1193_v52, %v2867_v34 }
 0x719   : > { %1199 = vadd.xlane.f32.xlu0 %v1198_v53 }
 0x71a   : > { %v1201_v55 = vsel %vm815_vm1, %v1195_v54, 0.0 }
 0x71b   : > { %1202 = vadd.xlane.f32.xlu1 %v1201_v55 }
 0x7a6   : > { %v1200_v56 = vpop.xlane.xlu0 %1199 }
 0x7a7   : > { %v1204_v57 = vmul.f32 0.03125, %v1200_v56 }
 0x7a8   : > { %v1203_v58 = vpop.xlane.xlu1 %1202 }
 0x7a9   : > { %v1206_v59 = vsub.f32 %v1194_v51, %v1204_v57  ;;  %v1205_v60 = vmul.f32 0.03125, %v1203_v58 }
 0x7ab   : > { %v1207_v61 = vsub.f32 %v1195_v54, %v1205_v60  ;;  %v1208_v33 = vmul.f32 %v1206_v59, %v1206_v59 }
 0x7ad   : > { %v1210_v62 = vsel %vm815_vm1, %v1208_v33, 0.0  ;;  %v1209_v63 = vmul.f32 %v1207_v61, %v1207_v61 }
 0x7ae   : > { %1211 = vadd.xlane.f32.xlu0 %v1210_v62 }
 0x7af   : > { %v1213_v34 = vsel %vm815_vm1, %v1209_v63, 0.0 }
 0x7b2   : > { %1214 = vadd.xlane.f32.xlu0 %v1213_v34 }
 0x83b   : > { %v1212_v4 = vpop.xlane.xlu0 %1211 }
 0x83c   : > { %v1216_v5 = vmul.f32 0.03125, %v1212_v4 }
 0x83e   : > { %v1218_v6 = vadd.f32 1e-05, %v1216_v5 }
 0x83f   : > { %v1215_v40 = vpop.xlane.xlu0 %1214 }
 0x840   : > { %1962 = vrsqrt.f32 %v1218_v6  ;;  %v1217_v7 = vmul.f32 0.03125, %v1215_v40 }
 0x842   : > { %v1219_v8 = vadd.f32 1e-05, %v1217_v7 }
 0x844   : > { %1964 = vrsqrt.f32 %v1219_v8 }
 0x84a   : > { %v1963_v9 = vpop.eup %1962 }
 0x84b   : > { %v1222_v10 = vmul.f32 %v1963_v9, %v1206_v59 }
 0x84d   : > { %v1230_v13 = vmul.f32 %v1751_v11, %v1222_v10 }
 0x84e   : > { %v1965_v12 = vpop.eup %1964 }
 0x84f   : > { %v1223_v14 = vmul.f32 %v1965_v12, %v1207_v61  ;;  %v1238_v18 = vadd.f32 %v1752_v15, %v1230_v13 }
 0x851   : > { %v1231_v16 = vmul.f32 %v1751_v11, %v1223_v14 }
 0x853   : > { %v1239_v19 = vadd.f32 %v1752_v15, %v1231_v16 }
 0x855   : > { %v1240_v20 = vpack.c.bf16 %v1239_v19, %v1238_v18 }
 0x857   : > { %1807 = vmatmul.mubr.msk.bf16.vlgmr.msra.gmra.mrb[4].mxu0 %vm815_vm1, %v1240_v20  ;;  %1815 = vmatmul.mubr.msk.bf16.vlgmr.msra.gmra.mrb[4].mxu1 %vm815_vm1, %v1240_v20 }
 0x858   : > { %1822 = vmatprep.mubr.msk.bf16.mxu0 %vm2350_vm2, %v2349_v17  ;;  %1819 = vmatpush3.bf16.msra.mxu0 %v1952_v21 }
 0x859   : > { %1820 = vmatprep.subr.bf16.mxu0 %v2349_v17 }
 0x85c   : > { %1821 = vmatpush3.bf16.msra.mxu0 %v1953_v22 }
 0x92a   : > { %v1294_v23 = vpop.f32.mrb[4].mxu0  ;;  %v1351_v24 = vpop.f32.mrb[4].mxu1 }
 0x92b   : > { %v1358_v25 = vmul.f32 %v1351_v24, %v1351_v24  ;;  %v1808_v26 = vpop.f32.mrb[5].mxu0  ;;  %v1816_v27 = vpop.f32.mrb[5].mxu1 }
 0x92c   : > { %v1297_v28 = vpop.f32.mrb[6].mxu0  ;;  %v1354_v29 = vpop.f32.mrb[6].mxu1 }
 0x92d   : > { %v1360_v30 = vmul.f32 %v1358_v25, %v1351_v24  ;;  %v1359_v31 = vmul.f32 %v1354_v29, %v1354_v29  ;;  %v1809_v32 = vpop.f32.mrb[7].mxu0  ;;  %v1817_v35 = vpop.f32.mrb[7].mxu1 }
 0x92f   : > { %v1362_v36 = vmul.f32 0.044715, %v1360_v30  ;;  %v1361_v38 = vmul.f32 %v1359_v31, %v1354_v29 }
 0x931   : > { %v1364_v41 = vadd.f32 %v1362_v36, %v1351_v24  ;;  %v1363_v42 = vmul.f32 0.044715, %v1361_v38 }
 0x933   : > { %v1366_v43 = vmul.f32 0.7978846, %v1364_v41  ;;  %v1365_v17 = vadd.f32 %v1363_v42, %v1354_v29 }
 0x935   : > { %1966 = vtanh.f32 %v1366_v43  ;;  %v1367_v37 = vmul.f32 0.7978846, %v1365_v17 }
 0x937   : > { %1968 = vtanh.f32 %v1367_v37 }
 0x93f   : > { %v1967_v44 = vpop.eup %1966 }
 0x940   : > { %v1370_v45 = vadd.f32 1.0, %v1967_v44 }
 0x941   : > { %v1969_v46 = vpop.eup %1968 }
 0x942   : > { %v1372_v47 = vmul.f32 0.5, %v1370_v45  ;;  %v1371_v39 = vadd.f32 1.0, %v1969_v46 }
 0x944   : > { %v1374_v48 = vmul.f32 %v1372_v47, %v1351_v24  ;;  %v1373_v49 = vmul.f32 0.5, %v1371_v39 }
 0x946   : > { %v1376_v50 = vmul.f32 %v1374_v48, %v1294_v23  ;;  %v1375_v51 = vmul.f32 %v1373_v49, %v1354_v29 }
 0x948   : > { %v1377_v52 = vmul.f32 %v1375_v51, %v1297_v28 }
 0x94a   : > { %v1378_v53 = vpack.c.bf16 %v1377_v52, %v1376_v50 }
 0x94c   : > { %1823 = vmatmul.mubr.msk.bf16.vlgmr.msra.gmra.mrb[8].mxu0 %vm815_vm1, %v1378_v53 }
 0xa1f   : > { %v1432_v54 = vpop.f32.mrb[8].mxu0 }
 0xa20   : > { %v1439_v55 = vadd.f32 %v1432_v54, %v1238_v18  ;;  %v1824_v56 = vpop.f32.mrb[9].mxu0 }
 0xa21   : > { %v1435_v57 = vpop.f32.mrb[10].mxu0 }
 0xa22   : > { %1441 = vst.msk [vmem:[#allocation17] sm:$0xff] %vm815_vm1, %v1439_v55  ;;  %v1440_v58 = vadd.f32 %v1435_v57, %v1239_v19  ;;  %v1825_v59 = vpop.f32.mrb[11].mxu0 }
 0xa24   : > { %1442 = vst.msk [vmem:[#allocation17 + $0x8] sm:$0xff] %vm815_vm1, %v1440_v58 }
 0xa25   : > { %2251 = shalt.err (!%p2248_p11)
}
 0xa26   : > { %s3092_s19 = sld [smem:[#allocation38_spill]] }
 0xa2c   : > { %s2252_s30 = scalar_lea.hbm %s3092_s19, 256 }
 0xa2d   : > { %p2253_p4 = scmp.ne.s32.totalorder %s3092_s19, %s2252_s30  ;;  %p2258_p7 = scmp.lt.u32.totalorder %s2252_s30, %s3092_s19 }
 0xa2f   : > { %p2254_p3 = pnand %p2253_p4, %p1882_p9 }
 0xa31   : > { %p2255_p8 = pneg %p2254_p3 }
 0xa33   : > { %p2260_p13 = pnand %p2258_p7, %p2255_p8 }
 0xa35   : > { %2263 = shalt.err (!%p2260_p13)
}
 0xa36   : > { %s2354_s23 = smov 128   ;;  %s2355_s3 = smov 8  }
 0xa37   : > { %1847 = dma.vmem_to_hbm [thread:$0]  (%p1882_p9), %s1453_s24, 256, %s3092_s19, [#allocation4], %s2354_s23, %s2354_s23, %s2355_s3  }
 0xa38   : > { %2309 = dma.done.wait (%p1882_p9), [#allocation4], 256  }
 0xa39   : > { %2311 = vsyncadd (%p1882_p9), [#allocation4], 4294967040 }
 0xa3a PF: > { %s3093_s6 = sld [smem:[#allocation27_spill]]  ;;  %s3094_s29 = sld [smem:[#allocation24_spill]] }
 0xa3b   : > { %s3095_s27 = sld [smem:[#allocation29_spill]]  ;;  %s3096_s28 = sld [smem:[#allocation26_spill]] }
 0xa3c   : > { %s3097_s5 = sld [smem:[#allocation28_spill]]  ;;  %s3098_s25 = smov %s2318_s26 }
 0xa40   : > { %s37_s30 = sadd.s32 1, %s3093_s6   ;;  %s3099_s26 = smov %s3094_s29 }
 0xa41   : > { %p34_p10 = scmp.ge.s32.totalorder %s37_s30, 4  }
 0xa42   : > { %s3100_s29 = smov %s3097_s5 }
 0xa43   :  { %36 = sbr.rel (!%p34_p10) target bundleno = 22 (0x16), region = 215 }
 0xa4a   :  { %1468 = vsyncpa [#allocation3], 1 }
 0xa4b   :  { %1470 = vsyncpa [#allocation3 + $0x1], 1 }
 0xa4c   :  { %1471 = vsyncpa [#allocation6], 1 }
 0xa4d   :  { %1473 = vsyncpa [#allocation6 + $0x1], 1 }
 0xa4e   :  { %1474 = vsyncpa [#allocation9], 1 }
 0xa4f   :  { %1476 = vsyncpa [#allocation9 + $0x1], 1 }
 0xa50   :  { %1477 = vsyncpa [#allocation12], 1 }
 0xa51   :  { %1479 = vsyncpa [#allocation12 + $0x1], 1 }
 0xa52   :  { %1480 = vsyncpa [#allocation15], 1 }
 0xa53   :  { %1482 = vsyncpa [#allocation15 + $0x1], 1 }
 0xa54   :  { %1483 = vsyncpa [#allocation4], 1 }
 0xa55   :  { %1485 = vsyncpa [#allocation4 + $0x1], 1 }

</bundles_post_ra>
